<compile_context>
chip_gen: v6e
topology: v6e:2x2x1
jax: 0.10.0
libtpu: 0.0.40
codegen_flags: <defaults>
</compile_context>

<pallas_src>
import functools
import math

import numpy as np

import jax
import jax.numpy as jnp
from jax import lax
from jax.experimental import pallas as pl
from jax.experimental.pallas import tpu as pltpu

# ----------------------------------------------------------------------------
# Hyper-parameters (the globals the torch module refers to).
# ----------------------------------------------------------------------------
CHANNELS = 3
CNN_EMBEDDING = 32
ATTENTION_HEADS = 4
N = 8                        # patches per image
PATCH_SIZE = 28              # conv chain: 28 -> 27 -> 13 -> 6 -> 3 -> 1x1
CHUNK_SIZE = 2               # torch chunking (semantic no-op, see NOTE above)
DIVISION = CNN_EMBEDDING // ATTENTION_HEADS
SCALE = 1.0 / math.sqrt(float(DIVISION))

C1 = CNN_EMBEDDING // 4      # 8   conv1 output channels
C2 = CNN_EMBEDDING // 2      # 16  conv2 output channels
H0 = PATCH_SIZE              # 28  input height / width
H1 = PATCH_SIZE              # 28  padded conv1 output grid (valid rows/cols 0..26)
H1P = 12                     # pool1 rows/cols actually consumed by conv2
H2 = 6                       # conv2 output grid
H2P = 3                      # pool2 output grid
ROWS_IN = CHANNELS * H0      # 84   (channel, h) rows of the flattened image
COLS_IN = N * H0             # 224  (patch, w) columns of the flattened image
COLS_PAD = 256               # lane-padded columns (2 full 128-lane groups)
K1 = 2 * ROWS_IN             # 168  conv1 contraction dim (two column taps stacked)
HN = ATTENTION_HEADS * N     # 32   rows of the re-blocked Q / K


# ----------------------------------------------------------------------------
# Structured 0/1 selection matrices (pure structure -> numpy, built once).
# Conv / pool on the 2-D layout  A[row = channel*H + h, col = patch*W + w]
# become  out = sum_taps  L_tap @ A @ R_tap  (L carries weights + row shift,
# R is a 0/1 column selector); max-pool is the elementwise max of its taps.
# ----------------------------------------------------------------------------
def _shift_select(n_out, n_in, stride, offset):
    """0/1 selector: row i picks input index i*stride + offset (if in range)."""
    m = np.zeros((n_out, n_in), np.float32)
    for i in range(n_out):
        j = i * stride + offset
        if j < n_in:
            m[i, j] = 1.0
    return m


_SH1 = [_shift_select(H1, H0, 1, d) for d in range(2)]      # conv1 row taps (28, 28)
_SH2 = [_shift_select(H2, H1P, 2, d) for d in range(2)]     # conv2 row taps (6, 12)

# pool1: row taps stacked on sublanes; column taps at lane offsets 0 / 128.
_LP1 = np.concatenate(
    [np.kron(np.eye(C1, dtype=np.float32), _shift_select(H1P, H1, 2, d))
     for d in range(2)], axis=0)                            # (192, 224)
_RP1 = np.zeros((COLS_PAD, 224), np.float32)                # rows >= 224 stay zero:
for _d in range(2):                                         # they kill the lane-pad
    _RP1[:COLS_IN, 128 * _d:128 * _d + N * H1P] = np.kron(  # garbage columns of a1.
        np.eye(N, dtype=np.float32), _shift_select(H1P, H0, 2, _d).T)

# conv2 right selector: the two column taps stacked on sublanes.
_R2 = np.concatenate(
    [np.kron(np.eye(N, dtype=np.float32), _shift_select(H2, H1P, 2, d).T)
     for d in range(2)], axis=0)                            # (192, 48)

# pool2: same recipe as pool1.
_LP2 = np.concatenate(
    [np.kron(np.eye(C2, dtype=np.float32), _shift_select(H2P, H2, 2, d))
     for d in range(2)], axis=0)                            # (96, 96)
_RP2 = np.zeros((N * H2, 152), np.float32)                  # (48, 152)
for _d in range(2):
    _RP2[:, 128 * _d:128 * _d + N * H2P] = np.kron(
        np.eye(N, dtype=np.float32), _shift_select(H2P, H2, 2, _d).T)

# conv3 (3x3 stride 3 on a 3x3 input == fully connected): column selectors.
_R3 = np.concatenate(
    [np.kron(np.eye(N, dtype=np.float32), np.eye(3, dtype=np.float32)[:, d:d + 1])
     for d in range(3)], axis=0)                            # (72, 8)

# Wrapper-side gather table: kernel writes scores for q/k rows ordered
# (feature-block jb)*8 + patch; torch's head split wants row (n%4)*8 + 2h + n//4.
_HEAD_IDX = np.array(
    [[(n % 4) * 8 + 2 * h + n // 4 for n in range(N)]
     for h in range(ATTENTION_HEADS)], np.int32)            # (4, 8)


# ----------------------------------------------------------------------------
# The fused Pallas kernel (one grid step == one batch item, all 8 patches).
# ----------------------------------------------------------------------------
def _fused_kernel(x_ref, l1_ref, lp1_ref, rp1_ref, l2_ref, r2_ref,
                  lp2_ref, rp2_ref, w3_ref, r3_ref,
                  b1_ref, b2_ref, b3_ref, wqk_ref, out_ref):
    f32, bf16 = jnp.float32, jnp.bfloat16

    def mm(a, b):
        return jnp.dot(a, b, preferred_element_type=f32)

    x = x_ref[0]                                             # (168, 256) bf16

    # ---- conv1 (2x2, stride 1): both column taps in ONE K=168 matmul --------
    # Lane-pad columns (>=224) and the per-patch w=27 column hold bias+ReLU
    # garbage / cross-patch bleed after this step; they are NEVER selected by
    # the pool matrices below (pool consumes w <= 23, h <= 23 per patch only).
    a1 = jnp.maximum(mm(l1_ref[...], x) + b1_ref[...], 0.0)  # (224, 256) f32
    a1b = a1.astype(bf16)

    # ---- pool1: one stacked left matmul + two lane-offset right matmuls -----
    u1 = mm(lp1_ref[...], a1b).astype(bf16)                  # (192, 256)
    rp1 = rp1_ref[...]
    v0 = mm(u1[0:96, :], rp1)                                # (96, 224) f32
    v1 = mm(u1[96:192, :], rp1)
    p1 = jnp.maximum(jnp.maximum(v0[:, 0:96], v0[:, 128:224]),
                     jnp.maximum(v1[:, 0:96], v1[:, 128:224]))   # (96, 96)

    # ---- conv2 (2x2, stride 2): row taps pre-summed, column taps stacked ----
    t = mm(l2_ref[...], p1)                                  # (192, 96)
    r2 = r2_ref[...]
    a2 = mm(t[0:96, :], r2[0:96, :]) + mm(t[96:192, :], r2[96:192, :])
    a2 = jnp.maximum(a2 + b2_ref[...], 0.0)                  # (96, 48)

    # ---- pool2 ---------------------------------------------------------------
    u2 = mm(lp2_ref[...], a2)                                # (96, 48)
    rp2 = rp2_ref[...]
    z0 = mm(u2[0:48, :], rp2)                                # (48, 152)
    z1 = mm(u2[48:96, :], rp2)
    p2 = jnp.maximum(jnp.maximum(z0[:, 0:24], z0[:, 128:152]),
                     jnp.maximum(z1[:, 0:24], z1[:, 128:152]))   # (48, 24)

    # ---- conv3 (3x3 stride 3 == fully connected per patch) ------------------
    g = mm(w3_ref[...], p2)                                  # (96, 24)
    r3 = r3_ref[...]
    emb = (mm(g[0:32, :], r3[0:24, :]) +
           mm(g[32:64, :], r3[24:48, :]) +
           mm(g[64:96, :], r3[48:72, :]))
    emb = jnp.maximum(emb + b3_ref[...], 0.0)                # (32, 8) channel-major

    # ---- fused Q/K projection; ALL head scores via one 32x8x32 matmul --------
    # 1/sqrt(div) is pre-folded into WQ in the wrapper.  (emb.T is a tiny 32x8
    # transpose; kept because it is a proven-to-lower op here.)
    qk = mm(emb.T, wqk_ref[...])                             # (8, 64)
    q_s = jnp.concatenate([qk[:, 8 * j:8 * j + 8] for j in range(4)], axis=0)       # (32, 8)
    k_s = jnp.concatenate([qk[:, 32 + 8 * j:40 + 8 * j] for j in range(4)], axis=0)  # (32, 8)
    scores = lax.dot_general(q_s, k_s, (((1,), (1,)), ((), ())),
                             preferred_element_type=f32)     # (32, 32)
    out_ref[0] = scores


# ----------------------------------------------------------------------------
# Wrapper: input / weight layout plumbing (all static, outside the kernel).
# ----------------------------------------------------------------------------
def _prepare_image(image):
    """(B, N, C, 28, 28) -> (B, 168, 256) bf16: flattened (channel,h)x(patch,w)
    image stacked on sublanes with its one-column-left-shifted copy (the two
    conv1 column taps), zero-padded to 256 lanes."""
    b = image.shape[0]
    x = jnp.transpose(image, (0, 2, 3, 1, 4)).reshape(b, ROWS_IN, COLS_IN)
    x1 = jnp.pad(x[:, :, 1:], ((0, 0), (0, 0), (0, 1)))      # column w <- w+1
    xcat = jnp.concatenate([x, x1], axis=1)                  # (B, 168, 224)
    xcat = jnp.pad(xcat, ((0, 0), (0, 0), (0, COLS_PAD - COLS_IN)))
    return xcat.astype(jnp.bfloat16)


def _prepare_weights(params):
    w1, w2, w3 = params["w1"], params["w2"], params["w3"]
    sh1 = [jnp.asarray(s) for s in _SH1]
    sh2 = [jnp.asarray(s) for s in _SH2]

    # conv1 left factor: both column taps concatenated on the contraction dim.
    l1 = jnp.concatenate(
        [sum(jnp.einsum("oc,hg->ohcg", w1[:, :, di, dj], sh1[di])
             .reshape(C1 * H1, ROWS_IN) for di in range(2))
         for dj in range(2)], axis=1).astype(jnp.bfloat16)        # (224, 168)

    # conv2 left factor: row taps pre-summed per column tap, taps stacked.
    l2 = jnp.concatenate(
        [sum(jnp.einsum("oc,hg->ohcg", w2[:, :, di, dj], sh2[di])
             .reshape(C2 * H2, C1 * H1P) for di in range(2))
         for dj in range(2)], axis=0)                             # (192, 96)

    # conv3 left factor: the three column taps stacked on sublanes.
    w3l = jnp.concatenate(
        [w3[:, :, :, dj].reshape(CNN_EMBEDDING, C2 * H2P) for dj in range(3)],
        axis=0)                                                   # (96, 48)

    b1e = jnp.repeat(params["b1"], H1)[:, None]                   # (224, 1)
    b2e = jnp.repeat(params["b2"], H2)[:, None]                   # (96, 1)
    b3e = params["b3"][:, None]                                   # (32, 1)
    wqk = jnp.concatenate([params["wq"] * SCALE, params["wk"]], axis=1)  # (32, 64)
    return l1, l2, w3l, b1e, b2e, b3e, wqk


def conv_embeddings_forward(image, params):
    b = image.shape[0]
    xcat = _prepare_image(image)
    l1, l2, w3l, b1e, b2e, b3e, wqk = _prepare_weights(params)
    lp1 = jnp.asarray(_LP1, jnp.bfloat16)                    # 0/1 -> exact in bf16
    rp1 = jnp.asarray(_RP1, jnp.bfloat16)
    r2, lp2, rp2, r3 = (jnp.asarray(a) for a in (_R2, _LP2, _RP2, _R3))

    def full(arr):
        nd = arr.ndim
        return pl.BlockSpec(arr.shape, lambda i, _nd=nd: (0,) * _nd)

    grid_spec = pltpu.PrefetchScalarGridSpec(
        num_scalar_prefetch=0,
        grid=(b,),
        in_specs=[
            pl.BlockSpec((1, K1, COLS_PAD), lambda i: (i, 0, 0)),
            full(l1), full(lp1), full(rp1),
            full(l2), full(r2), full(lp2), full(rp2),
            full(w3l), full(r3),
            full(b1e), full(b2e), full(b3e), full(wqk),
        ],
        out_specs=pl.BlockSpec((1, HN, HN), lambda i: (i, 0, 0)),
    )

    scores = pl.pallas_call(
        _fused_kernel,
        out_shape=jax.ShapeDtypeStruct((b, HN, HN), jnp.float32),
        grid_spec=grid_spec,
        compiler_params=pltpu.CompilerParams(
            # 1-D batch grid: "parallel" lets v7x shard it across its two
            # TensorCores; on v5e/v6e it is a trivial serial loop.
            dimension_semantics=("parallel",),
            vmem_limit_bytes=16 * 1024 * 1024,   # honest bound; kernel uses ~3 MiB
        ),
    )(xcat, l1, lp1, rp1, l2, r2, lp2, rp2, w3l, r3, b1e, b2e, b3e, wqk)

    # Per-head attention matrices are a fixed gather of the 32x32 cross product.
    idx = jnp.asarray(_HEAD_IDX)
    return scores[:, idx[:, :, None], idx[:, None, :]]       # (B, H, N, N)


# ----------------------------------------------------------------------------
# Pure-JAX reference (XLA conv) for a numerical sanity check.
# ----------------------------------------------------------------------------
def reference_forward(image, params):
    b = image.shape[0]
    m = b * N
    x = image.reshape(m, CHANNELS, PATCH_SIZE, PATCH_SIZE)

    def conv(z, w, bias, s):
        y = lax.conv_general_dilated(z, w, (s, s), "VALID",
                                     dimension_numbers=("NCHW", "OIHW", "NCHW"))
        return y + bias[None, :, None, None]

    def pool(z):
        mm_, cc, hh, ww = z.shape
        ho, wo = hh // 2, ww // 2
        return z[:, :, :2 * ho, :2 * wo].reshape(mm_, cc, ho, 2, wo, 2).max(axis=(3, 5))

    y = pool(jax.nn.relu(conv(x, params["w1"], params["b1"], 1)))
    y = pool(jax.nn.relu(conv(y, params["w2"], params["b2"], 2)))
    y = jax.nn.relu(conv(y, params["w3"], params["b3"], 3))
    emb = y.reshape(m, CNN_EMBEDDING)
    qh = (emb @ params["wq"]).reshape(b, ATTENTION_HEADS, N, DIVISION)
    kh = (emb @ params["wk"]).reshape(b, ATTENTION_HEADS, N, DIVISION)
    return jnp.einsum("bhnd,bhmd->bhnm", qh, kh) * SCALE


# ----------------------------------------------------------------------------
# Deterministic parameter init (shapes from ConvEmbeddings.__init__).
# ----------------------------------------------------------------------------
def init_params(key):
    ks = jax.random.split(key, 8)
    e = CNN_EMBEDDING

    def unif(k, shape, fan_in):
        bound = 1.0 / math.sqrt(fan_in)
        return jax.random.uniform(k, shape, jnp.float32, -bound, bound)

    xav = math.sqrt(6.0 / (e + e))
    return dict(
        w1=unif(ks[0], (e // 4, CHANNELS, 2, 2), CHANNELS * 4),
        b1=unif(ks[1], (e // 4,), CHANNELS * 4),
        w2=unif(ks[2], (e // 2, e // 4, 2, 2), (e // 4) * 4),
        b2=unif(ks[3], (e // 2,), (e // 4) * 4),
        w3=unif(ks[4], (e, e // 2, 3, 3), (e // 2) * 9),
        b3=unif(ks[5], (e,), (e // 2) * 9),
        wq=jax.random.uniform(ks[6], (e, e), jnp.float32, -xav, xav),
        wk=jax.random.uniform(ks[7], (e, e), jnp.float32, -xav, xav),
    )


if __name__ == "__main__":
    key = jax.random.PRNGKey(0)
    pkey, xkey = jax.random.split(key)
    params = init_params(pkey)

    B = 2
    image = jax.random.normal(xkey, (B, N, CHANNELS, PATCH_SIZE, PATCH_SIZE), jnp.float32)

    fwd = jax.jit(functools.partial(conv_embeddings_forward, params=params))
    out = jax.block_until_ready(fwd(image))

    assert out.shape == (B, ATTENTION_HEADS, N, N)
    if bool(jnp.isnan(out).any()):          # mirrors the torch module's diagnostic
        print("nan in the attention output tensor")

    ref = jax.block_until_ready(reference_forward(image, params))
    np.testing.assert_allclose(np.asarray(out), np.asarray(ref), rtol=2e-2, atol=2e-2)

    print("KERNEL_OK")
</pallas_src>

<mosaic_0001>
module attributes {stable_mosaic.version = 11 : i64} {
  func.func @_fused_kernel(%arg0: i32, %arg1: memref<1x168x256xbf16, #tpu.memory_space<vmem>>, %arg2: memref<224x168xbf16, #tpu.memory_space<vmem>>, %arg3: memref<192x224xbf16, #tpu.memory_space<vmem>>, %arg4: memref<256x224xbf16, #tpu.memory_space<vmem>>, %arg5: memref<192x96xf32, #tpu.memory_space<vmem>>, %arg6: memref<192x48xf32, #tpu.memory_space<vmem>>, %arg7: memref<96x96xf32, #tpu.memory_space<vmem>>, %arg8: memref<48x152xf32, #tpu.memory_space<vmem>>, %arg9: memref<96x48xf32, #tpu.memory_space<vmem>>, %arg10: memref<72x8xf32, #tpu.memory_space<vmem>>, %arg11: memref<224x1xf32, #tpu.memory_space<vmem>>, %arg12: memref<96x1xf32, #tpu.memory_space<vmem>>, %arg13: memref<32x1xf32, #tpu.memory_space<vmem>>, %arg14: memref<32x64xf32, #tpu.memory_space<vmem>>, %arg15: memref<1x32x32xf32, #tpu.memory_space<vmem>>) attributes {dimension_semantics = [#tpu.dimension_semantics<parallel>], iteration_bounds = array<i64: 2>, scalar_prefetch = 0 : i64, scratch_operands = 0 : i64, tpu.core_type = #tpu.core_type<tc>, window_params = [{transform_indices = @transform_0, window_bounds = array<i64: 1, 168, 256>}, {pipeline_mode = #tpu.pipeline_mode<synchronous>, transform_indices = @transform_1, window_bounds = array<i64: 224, 168>}, {pipeline_mode = #tpu.pipeline_mode<synchronous>, transform_indices = @transform_2, window_bounds = array<i64: 192, 224>}, {pipeline_mode = #tpu.pipeline_mode<synchronous>, transform_indices = @transform_3, window_bounds = array<i64: 256, 224>}, {pipeline_mode = #tpu.pipeline_mode<synchronous>, transform_indices = @transform_4, window_bounds = array<i64: 192, 96>}, {pipeline_mode = #tpu.pipeline_mode<synchronous>, transform_indices = @transform_5, window_bounds = array<i64: 192, 48>}, {pipeline_mode = #tpu.pipeline_mode<synchronous>, transform_indices = @transform_6, window_bounds = array<i64: 96, 96>}, {pipeline_mode = #tpu.pipeline_mode<synchronous>, transform_indices = @transform_7, window_bounds = array<i64: 48, 152>}, {pipeline_mode = #tpu.pipeline_mode<synchronous>, transform_indices = @transform_8, window_bounds = array<i64: 96, 48>}, {pipeline_mode = #tpu.pipeline_mode<synchronous>, transform_indices = @transform_9, window_bounds = array<i64: 72, 8>}, {pipeline_mode = #tpu.pipeline_mode<synchronous>, transform_indices = @transform_10, window_bounds = array<i64: 224, 1>}, {pipeline_mode = #tpu.pipeline_mode<synchronous>, transform_indices = @transform_11, window_bounds = array<i64: 96, 1>}, {pipeline_mode = #tpu.pipeline_mode<synchronous>, transform_indices = @transform_12, window_bounds = array<i64: 32, 1>}, {pipeline_mode = #tpu.pipeline_mode<synchronous>, transform_indices = @transform_13, window_bounds = array<i64: 32, 64>}, {transform_indices = @transform_14, window_bounds = array<i64: 1, 32, 32>}]} {
    %c0 = arith.constant 0 : index
    %c0_0 = arith.constant 0 : index
    %c0_1 = arith.constant 0 : index
    %0 = vector.load %arg1[%c0, %c0_0, %c0_1] : memref<1x168x256xbf16, #tpu.memory_space<vmem>>, vector<1x168x256xbf16>
    %1 = vector.shape_cast %0 : vector<1x168x256xbf16> to vector<168x256xbf16>
    %c0_2 = arith.constant 0 : index
    %c0_3 = arith.constant 0 : index
    %2 = vector.load %arg2[%c0_2, %c0_3] : memref<224x168xbf16, #tpu.memory_space<vmem>>, vector<224x168xbf16>
    %cst = arith.constant dense<0.000000e+00> : vector<224x256xf32>
    %3 = tpu.matmul %2, %1, %cst {dimension_numbers = #tpu.dot_dimension_numbers<[1], [0], [0], [1], [0, 0, 1, 1], [], []>} : vector<224x168xbf16>, vector<168x256xbf16>, vector<224x256xf32> -> vector<224x256xf32>
    %c0_4 = arith.constant 0 : index
    %c0_5 = arith.constant 0 : index
    %4 = vector.load %arg11[%c0_4, %c0_5] : memref<224x1xf32, #tpu.memory_space<vmem>>, vector<224x1xf32>
    %5 = vector.broadcast %4 : vector<224x1xf32> to vector<224x256xf32>
    %6 = arith.addf %3, %5 : vector<224x256xf32>
    %cst_6 = arith.constant 0.000000e+00 : f32
    %7 = vector.broadcast %cst_6 : f32 to vector<224x256xf32>
    %8 = arith.maximumf %6, %7 : vector<224x256xf32>
    %9 = arith.truncf %8 : vector<224x256xf32> to vector<224x256xbf16>
    %c0_7 = arith.constant 0 : index
    %c0_8 = arith.constant 0 : index
    %10 = vector.load %arg3[%c0_7, %c0_8] : memref<192x224xbf16, #tpu.memory_space<vmem>>, vector<192x224xbf16>
    %cst_9 = arith.constant dense<0.000000e+00> : vector<192x256xf32>
    %11 = tpu.matmul %10, %9, %cst_9 {dimension_numbers = #tpu.dot_dimension_numbers<[1], [0], [0], [1], [0, 0, 1, 1], [], []>} : vector<192x224xbf16>, vector<224x256xbf16>, vector<192x256xf32> -> vector<192x256xf32>
    %12 = arith.truncf %11 : vector<192x256xf32> to vector<192x256xbf16>
    %c0_10 = arith.constant 0 : index
    %c0_11 = arith.constant 0 : index
    %13 = vector.load %arg4[%c0_10, %c0_11] : memref<256x224xbf16, #tpu.memory_space<vmem>>, vector<256x224xbf16>
    %14 = vector.extract_strided_slice %12 {offsets = [0, 0], sizes = [96, 256], strides = [1, 1]} : vector<192x256xbf16> to vector<96x256xbf16>
    %cst_12 = arith.constant dense<0.000000e+00> : vector<96x224xf32>
    %15 = tpu.matmul %14, %13, %cst_12 {dimension_numbers = #tpu.dot_dimension_numbers<[1], [0], [0], [1], [0, 0, 1, 1], [], []>} : vector<96x256xbf16>, vector<256x224xbf16>, vector<96x224xf32> -> vector<96x224xf32>
    %16 = vector.extract_strided_slice %12 {offsets = [96, 0], sizes = [96, 256], strides = [1, 1]} : vector<192x256xbf16> to vector<96x256xbf16>
    %cst_13 = arith.constant dense<0.000000e+00> : vector<96x224xf32>
    %17 = tpu.matmul %16, %13, %cst_13 {dimension_numbers = #tpu.dot_dimension_numbers<[1], [0], [0], [1], [0, 0, 1, 1], [], []>} : vector<96x256xbf16>, vector<256x224xbf16>, vector<96x224xf32> -> vector<96x224xf32>
    %18 = vector.extract_strided_slice %15 {offsets = [0, 0], sizes = [96, 96], strides = [1, 1]} : vector<96x224xf32> to vector<96x96xf32>
    %19 = vector.extract_strided_slice %15 {offsets = [0, 128], sizes = [96, 96], strides = [1, 1]} : vector<96x224xf32> to vector<96x96xf32>
    %20 = arith.maximumf %18, %19 : vector<96x96xf32>
    %21 = vector.extract_strided_slice %17 {offsets = [0, 0], sizes = [96, 96], strides = [1, 1]} : vector<96x224xf32> to vector<96x96xf32>
    %22 = vector.extract_strided_slice %17 {offsets = [0, 128], sizes = [96, 96], strides = [1, 1]} : vector<96x224xf32> to vector<96x96xf32>
    %23 = arith.maximumf %21, %22 : vector<96x96xf32>
    %24 = arith.maximumf %20, %23 : vector<96x96xf32>
    %c0_14 = arith.constant 0 : index
    %c0_15 = arith.constant 0 : index
    %25 = vector.load %arg5[%c0_14, %c0_15] : memref<192x96xf32, #tpu.memory_space<vmem>>, vector<192x96xf32>
    %cst_16 = arith.constant dense<0.000000e+00> : vector<192x96xf32>
    %26 = tpu.matmul %25, %24, %cst_16 {dimension_numbers = #tpu.dot_dimension_numbers<[1], [0], [0], [1], [0, 0, 1, 1], [], []>} : vector<192x96xf32>, vector<96x96xf32>, vector<192x96xf32> -> vector<192x96xf32>
    %c0_17 = arith.constant 0 : index
    %c0_18 = arith.constant 0 : index
    %27 = vector.load %arg6[%c0_17, %c0_18] : memref<192x48xf32, #tpu.memory_space<vmem>>, vector<192x48xf32>
    %28 = vector.extract_strided_slice %26 {offsets = [0, 0], sizes = [96, 96], strides = [1, 1]} : vector<192x96xf32> to vector<96x96xf32>
    %29 = vector.extract_strided_slice %27 {offsets = [0, 0], sizes = [96, 48], strides = [1, 1]} : vector<192x48xf32> to vector<96x48xf32>
    %cst_19 = arith.constant dense<0.000000e+00> : vector<96x48xf32>
    %30 = tpu.matmul %28, %29, %cst_19 {dimension_numbers = #tpu.dot_dimension_numbers<[1], [0], [0], [1], [0, 0, 1, 1], [], []>} : vector<96x96xf32>, vector<96x48xf32>, vector<96x48xf32> -> vector<96x48xf32>
    %31 = vector.extract_strided_slice %26 {offsets = [96, 0], sizes = [96, 96], strides = [1, 1]} : vector<192x96xf32> to vector<96x96xf32>
    %32 = vector.extract_strided_slice %27 {offsets = [96, 0], sizes = [96, 48], strides = [1, 1]} : vector<192x48xf32> to vector<96x48xf32>
    %cst_20 = arith.constant dense<0.000000e+00> : vector<96x48xf32>
    %33 = tpu.matmul %31, %32, %cst_20 {dimension_numbers = #tpu.dot_dimension_numbers<[1], [0], [0], [1], [0, 0, 1, 1], [], []>} : vector<96x96xf32>, vector<96x48xf32>, vector<96x48xf32> -> vector<96x48xf32>
    %34 = arith.addf %30, %33 : vector<96x48xf32>
    %c0_21 = arith.constant 0 : index
    %c0_22 = arith.constant 0 : index
    %35 = vector.load %arg12[%c0_21, %c0_22] : memref<96x1xf32, #tpu.memory_space<vmem>>, vector<96x1xf32>
    %36 = vector.broadcast %35 : vector<96x1xf32> to vector<96x48xf32>
    %37 = arith.addf %34, %36 : vector<96x48xf32>
    %cst_23 = arith.constant 0.000000e+00 : f32
    %38 = vector.broadcast %cst_23 : f32 to vector<96x48xf32>
    %39 = arith.maximumf %37, %38 : vector<96x48xf32>
    %c0_24 = arith.constant 0 : index
    %c0_25 = arith.constant 0 : index
    %40 = vector.load %arg7[%c0_24, %c0_25] : memref<96x96xf32, #tpu.memory_space<vmem>>, vector<96x96xf32>
    %cst_26 = arith.constant dense<0.000000e+00> : vector<96x48xf32>
    %41 = tpu.matmul %40, %39, %cst_26 {dimension_numbers = #tpu.dot_dimension_numbers<[1], [0], [0], [1], [0, 0, 1, 1], [], []>} : vector<96x96xf32>, vector<96x48xf32>, vector<96x48xf32> -> vector<96x48xf32>
    %c0_27 = arith.constant 0 : index
    %c0_28 = arith.constant 0 : index
    %42 = vector.load %arg8[%c0_27, %c0_28] : memref<48x152xf32, #tpu.memory_space<vmem>>, vector<48x152xf32>
    %43 = vector.extract_strided_slice %41 {offsets = [0, 0], sizes = [48, 48], strides = [1, 1]} : vector<96x48xf32> to vector<48x48xf32>
    %cst_29 = arith.constant dense<0.000000e+00> : vector<48x152xf32>
    %44 = tpu.matmul %43, %42, %cst_29 {dimension_numbers = #tpu.dot_dimension_numbers<[1], [0], [0], [1], [0, 0, 1, 1], [], []>} : vector<48x48xf32>, vector<48x152xf32>, vector<48x152xf32> -> vector<48x152xf32>
    %45 = vector.extract_strided_slice %41 {offsets = [48, 0], sizes = [48, 48], strides = [1, 1]} : vector<96x48xf32> to vector<48x48xf32>
    %cst_30 = arith.constant dense<0.000000e+00> : vector<48x152xf32>
    %46 = tpu.matmul %45, %42, %cst_30 {dimension_numbers = #tpu.dot_dimension_numbers<[1], [0], [0], [1], [0, 0, 1, 1], [], []>} : vector<48x48xf32>, vector<48x152xf32>, vector<48x152xf32> -> vector<48x152xf32>
    %47 = vector.extract_strided_slice %44 {offsets = [0, 0], sizes = [48, 24], strides = [1, 1]} : vector<48x152xf32> to vector<48x24xf32>
    %48 = vector.extract_strided_slice %44 {offsets = [0, 128], sizes = [48, 24], strides = [1, 1]} : vector<48x152xf32> to vector<48x24xf32>
    %49 = arith.maximumf %47, %48 : vector<48x24xf32>
    %50 = vector.extract_strided_slice %46 {offsets = [0, 0], sizes = [48, 24], strides = [1, 1]} : vector<48x152xf32> to vector<48x24xf32>
    %51 = vector.extract_strided_slice %46 {offsets = [0, 128], sizes = [48, 24], strides = [1, 1]} : vector<48x152xf32> to vector<48x24xf32>
    %52 = arith.maximumf %50, %51 : vector<48x24xf32>
    %53 = arith.maximumf %49, %52 : vector<48x24xf32>
    %c0_31 = arith.constant 0 : index
    %c0_32 = arith.constant 0 : index
    %54 = vector.load %arg9[%c0_31, %c0_32] : memref<96x48xf32, #tpu.memory_space<vmem>>, vector<96x48xf32>
    %cst_33 = arith.constant dense<0.000000e+00> : vector<96x24xf32>
    %55 = tpu.matmul %54, %53, %cst_33 {dimension_numbers = #tpu.dot_dimension_numbers<[1], [0], [0], [1], [0, 0, 1, 1], [], []>} : vector<96x48xf32>, vector<48x24xf32>, vector<96x24xf32> -> vector<96x24xf32>
    %c0_34 = arith.constant 0 : index
    %c0_35 = arith.constant 0 : index
    %56 = vector.load %arg10[%c0_34, %c0_35] : memref<72x8xf32, #tpu.memory_space<vmem>>, vector<72x8xf32>
    %57 = vector.extract_strided_slice %55 {offsets = [0, 0], sizes = [32, 24], strides = [1, 1]} : vector<96x24xf32> to vector<32x24xf32>
    %58 = vector.extract_strided_slice %56 {offsets = [0, 0], sizes = [24, 8], strides = [1, 1]} : vector<72x8xf32> to vector<24x8xf32>
    %cst_36 = arith.constant dense<0.000000e+00> : vector<32x8xf32>
    %59 = tpu.matmul %57, %58, %cst_36 {dimension_numbers = #tpu.dot_dimension_numbers<[1], [0], [0], [1], [0, 0, 1, 1], [], []>} : vector<32x24xf32>, vector<24x8xf32>, vector<32x8xf32> -> vector<32x8xf32>
    %60 = vector.extract_strided_slice %55 {offsets = [32, 0], sizes = [32, 24], strides = [1, 1]} : vector<96x24xf32> to vector<32x24xf32>
    %61 = vector.extract_strided_slice %56 {offsets = [24, 0], sizes = [24, 8], strides = [1, 1]} : vector<72x8xf32> to vector<24x8xf32>
    %cst_37 = arith.constant dense<0.000000e+00> : vector<32x8xf32>
    %62 = tpu.matmul %60, %61, %cst_37 {dimension_numbers = #tpu.dot_dimension_numbers<[1], [0], [0], [1], [0, 0, 1, 1], [], []>} : vector<32x24xf32>, vector<24x8xf32>, vector<32x8xf32> -> vector<32x8xf32>
    %63 = arith.addf %59, %62 : vector<32x8xf32>
    %64 = vector.extract_strided_slice %55 {offsets = [64, 0], sizes = [32, 24], strides = [1, 1]} : vector<96x24xf32> to vector<32x24xf32>
    %65 = vector.extract_strided_slice %56 {offsets = [48, 0], sizes = [24, 8], strides = [1, 1]} : vector<72x8xf32> to vector<24x8xf32>
    %cst_38 = arith.constant dense<0.000000e+00> : vector<32x8xf32>
    %66 = tpu.matmul %64, %65, %cst_38 {dimension_numbers = #tpu.dot_dimension_numbers<[1], [0], [0], [1], [0, 0, 1, 1], [], []>} : vector<32x24xf32>, vector<24x8xf32>, vector<32x8xf32> -> vector<32x8xf32>
    %67 = arith.addf %63, %66 : vector<32x8xf32>
    %c0_39 = arith.constant 0 : index
    %c0_40 = arith.constant 0 : index
    %68 = vector.load %arg13[%c0_39, %c0_40] : memref<32x1xf32, #tpu.memory_space<vmem>>, vector<32x1xf32>
    %69 = vector.broadcast %68 : vector<32x1xf32> to vector<32x8xf32>
    %70 = arith.addf %67, %69 : vector<32x8xf32>
    %cst_41 = arith.constant 0.000000e+00 : f32
    %71 = vector.broadcast %cst_41 : f32 to vector<32x8xf32>
    %72 = arith.maximumf %70, %71 : vector<32x8xf32>
    %73 = tpu.transpose %72, [1, 0] : vector<32x8xf32> -> vector<8x32xf32>
    %c0_42 = arith.constant 0 : index
    %c0_43 = arith.constant 0 : index
    %74 = vector.load %arg14[%c0_42, %c0_43] : memref<32x64xf32, #tpu.memory_space<vmem>>, vector<32x64xf32>
    %cst_44 = arith.constant dense<0.000000e+00> : vector<8x64xf32>
    %75 = tpu.matmul %73, %74, %cst_44 {dimension_numbers = #tpu.dot_dimension_numbers<[1], [0], [0], [1], [0, 0, 1, 1], [], []>} : vector<8x32xf32>, vector<32x64xf32>, vector<8x64xf32> -> vector<8x64xf32>
    %76 = vector.extract_strided_slice %75 {offsets = [0, 0], sizes = [8, 8], strides = [1, 1]} : vector<8x64xf32> to vector<8x8xf32>
    %77 = vector.extract_strided_slice %75 {offsets = [0, 8], sizes = [8, 8], strides = [1, 1]} : vector<8x64xf32> to vector<8x8xf32>
    %78 = vector.extract_strided_slice %75 {offsets = [0, 16], sizes = [8, 8], strides = [1, 1]} : vector<8x64xf32> to vector<8x8xf32>
    %79 = vector.extract_strided_slice %75 {offsets = [0, 24], sizes = [8, 8], strides = [1, 1]} : vector<8x64xf32> to vector<8x8xf32>
    %80 = tpu.concatenate %76, %77, %78, %79 in 0 : vector<8x8xf32>, vector<8x8xf32>, vector<8x8xf32>, vector<8x8xf32> -> vector<32x8xf32>
    %81 = vector.extract_strided_slice %75 {offsets = [0, 32], sizes = [8, 8], strides = [1, 1]} : vector<8x64xf32> to vector<8x8xf32>
    %82 = vector.extract_strided_slice %75 {offsets = [0, 40], sizes = [8, 8], strides = [1, 1]} : vector<8x64xf32> to vector<8x8xf32>
    %83 = vector.extract_strided_slice %75 {offsets = [0, 48], sizes = [8, 8], strides = [1, 1]} : vector<8x64xf32> to vector<8x8xf32>
    %84 = vector.extract_strided_slice %75 {offsets = [0, 56], sizes = [8, 8], strides = [1, 1]} : vector<8x64xf32> to vector<8x8xf32>
    %85 = tpu.concatenate %81, %82, %83, %84 in 0 : vector<8x8xf32>, vector<8x8xf32>, vector<8x8xf32>, vector<8x8xf32> -> vector<32x8xf32>
    %cst_45 = arith.constant dense<0.000000e+00> : vector<32x32xf32>
    %86 = tpu.matmul %80, %85, %cst_45 {dimension_numbers = #tpu.dot_dimension_numbers<[1], [1], [0], [0], [0, 0, 1, 0], [], []>} : vector<32x8xf32>, vector<32x8xf32>, vector<32x32xf32> -> vector<32x32xf32>
    %c0_46 = arith.constant 0 : index
    %c0_47 = arith.constant 0 : index
    %c0_48 = arith.constant 0 : index
    %87 = vector.load %arg15[%c0_46, %c0_47, %c0_48] : memref<1x32x32xf32, #tpu.memory_space<vmem>>, vector<1x32x32xf32>
    %88 = vector.shape_cast %87 : vector<1x32x32xf32> to vector<32x32xf32>
    %89 = vector.shape_cast %86 : vector<32x32xf32> to vector<1x32x32xf32>
    tpu.vector_store %arg15[%c0_46, %c0_47, %c0_48], %89 {strides = array<i32>} : memref<1x32x32xf32, #tpu.memory_space<vmem>>, vector<1x32x32xf32>,
    return
  }
  func.func @transform_0(%arg0: i32) -> (i32, i32, i32) {
    %c0_i32 = arith.constant 0 : i32
    %c0_i32_0 = arith.constant 0 : i32
    %c0_i32_1 = arith.constant 0 : i32
    return %arg0, %c0_i32, %c0_i32_0 : i32, i32, i32
  }
  func.func @transform_1(%arg0: i32) -> (i32, i32) {
    %c0_i32 = arith.constant 0 : i32
    %c0_i32_0 = arith.constant 0 : i32
    %c0_i32_1 = arith.constant 0 : i32
    return %c0_i32, %c0_i32_0 : i32, i32
  }
  func.func @transform_2(%arg0: i32) -> (i32, i32) {
    %c0_i32 = arith.constant 0 : i32
    %c0_i32_0 = arith.constant 0 : i32
    %c0_i32_1 = arith.constant 0 : i32
    return %c0_i32, %c0_i32_0 : i32, i32
  }
  func.func @transform_3(%arg0: i32) -> (i32, i32) {
    %c0_i32 = arith.constant 0 : i32
    %c0_i32_0 = arith.constant 0 : i32
    %c0_i32_1 = arith.constant 0 : i32
    return %c0_i32, %c0_i32_0 : i32, i32
  }
  func.func @transform_4(%arg0: i32) -> (i32, i32) {
    %c0_i32 = arith.constant 0 : i32
    %c0_i32_0 = arith.constant 0 : i32
    %c0_i32_1 = arith.constant 0 : i32
    return %c0_i32, %c0_i32_0 : i32, i32
  }
  func.func @transform_5(%arg0: i32) -> (i32, i32) {
    %c0_i32 = arith.constant 0 : i32
    %c0_i32_0 = arith.constant 0 : i32
    %c0_i32_1 = arith.constant 0 : i32
    return %c0_i32, %c0_i32_0 : i32, i32
  }
  func.func @transform_6(%arg0: i32) -> (i32, i32) {
    %c0_i32 = arith.constant 0 : i32
    %c0_i32_0 = arith.constant 0 : i32
    %c0_i32_1 = arith.constant 0 : i32
    return %c0_i32, %c0_i32_0 : i32, i32
  }
  func.func @transform_7(%arg0: i32) -> (i32, i32) {
    %c0_i32 = arith.constant 0 : i32
    %c0_i32_0 = arith.constant 0 : i32
    %c0_i32_1 = arith.constant 0 : i32
    return %c0_i32, %c0_i32_0 : i32, i32
  }
  func.func @transform_8(%arg0: i32) -> (i32, i32) {
    %c0_i32 = arith.constant 0 : i32
    %c0_i32_0 = arith.constant 0 : i32
    %c0_i32_1 = arith.constant 0 : i32
    return %c0_i32, %c0_i32_0 : i32, i32
  }
  func.func @transform_9(%arg0: i32) -> (i32, i32) {
    %c0_i32 = arith.constant 0 : i32
    %c0_i32_0 = arith.constant 0 : i32
    %c0_i32_1 = arith.constant 0 : i32
    return %c0_i32, %c0_i32_0 : i32, i32
  }
  func.func @transform_10(%arg0: i32) -> (i32, i32) {
    %c0_i32 = arith.constant 0 : i32
    %c0_i32_0 = arith.constant 0 : i32
    %c0_i32_1 = arith.constant 0 : i32
    return %c0_i32, %c0_i32_0 : i32, i32
  }
  func.func @transform_11(%arg0: i32) -> (i32, i32) {
    %c0_i32 = arith.constant 0 : i32
    %c0_i32_0 = arith.constant 0 : i32
    %c0_i32_1 = arith.constant 0 : i32
    return %c0_i32, %c0_i32_0 : i32, i32
  }
  func.func @transform_12(%arg0: i32) -> (i32, i32) {
    %c0_i32 = arith.constant 0 : i32
    %c0_i32_0 = arith.constant 0 : i32
    %c0_i32_1 = arith.constant 0 : i32
    return %c0_i32, %c0_i32_0 : i32, i32
  }
  func.func @transform_13(%arg0: i32) -> (i32, i32) {
    %c0_i32 = arith.constant 0 : i32
    %c0_i32_0 = arith.constant 0 : i32
    %c0_i32_1 = arith.constant 0 : i32
    return %c0_i32, %c0_i32_0 : i32, i32
  }
  func.func @transform_14(%arg0: i32) -> (i32, i32, i32) {
    %c0_i32 = arith.constant 0 : i32
    %c0_i32_0 = arith.constant 0 : i32
    %c0_i32_1 = arith.constant 0 : i32
    return %arg0, %c0_i32, %c0_i32_0 : i32, i32, i32
  }
}

</mosaic_0001>

<bundles_post_ra>
// kernel: conv_embeddings_forward.1
= control target key start
LH: loop header
LB: loop body
LE: loop exit
PB: predicated region body
PF: predicated region fallthrough
CT: control target
= control target key end

     0   :  { %s4897_s29 = smov 0   ;;  %s6118_s0 = inlined_call_operand.vmem [shape: bf16[2,168,256], index: 0, kind: input, shape index: {}]   ;;  %s6119_s1 = inlined_call_operand.vmem [shape: bf16[224,168], index: 1, kind: input, shape index: {}]   ;;  %s6120_s2 = inlined_call_operand.vmem [shape: bf16[192,224], index: 2, kind: input, shape index: {}]   ;;  %s6121_s3 = inlined_call_operand.vmem [shape: bf16[256,224], index: 3, kind: input, shape index: {}]   ;;  %s6122_s4 = inlined_call_operand.vmem [shape: f32[192,96], index: 4, kind: input, shape index: {}]   ;;  %s6123_s5 = inlined_call_operand.vmem [shape: f32[192,48], index: 5, kind: input, shape index: {}]   ;;  %s6124_s6 = inlined_call_operand.vmem [shape: f32[96,96], index: 6, kind: input, shape index: {}]   ;;  %s6125_s7 = inlined_call_operand.vmem [shape: f32[48,152], index: 7, kind: input, shape index: {}]   ;;  %s6126_s8 = inlined_call_operand.vmem [shape: f32[96,48], index: 8, kind: input, shape index: {}]   ;;  %s6127_s9 = inlined_call_operand.vmem [shape: f32[72,8], index: 9, kind: input, shape index: {}]   ;;  %s6128_s10 = inlined_call_operand.vmem [shape: f32[224,1], index: 10, kind: input, shape index: {}]   ;;  %s6129_s11 = inlined_call_operand.vmem [shape: f32[96,1], index: 11, kind: input, shape index: {}]   ;;  %s6130_s12 = inlined_call_operand.vmem [shape: f32[32,1], index: 12, kind: input, shape index: {}]   ;;  %s6131_s13 = inlined_call_operand.vmem [shape: f32[32,64], index: 13, kind: input, shape index: {}]   ;;  %s6132_s14 = inlined_call_operand.vmem [shape: f32[2,32,32], index: 14, kind: output, shape index: {}]  }
   0x1 LB: > { %s3945_s30 = sadd.s32 4294967295, %s4813_s29   ;;  %p3949_p0 = scmp.ge.s32.totalorder %s4813_s29, 1  ;;  %s4813_s29 = sphi %s4897_s29, %s24_s29  }
   0x2   : > { %p412_p1 = scmp.lt.s32.totalorder %s4813_s29, 3 }
   0x4   : > { %p413_p2 = pnand %p3949_p0, %p412_p1 }
   0x5   : > { %p458_p3 = scmp.lt.s32.totalorder (!%p413_p2), %s3945_s30, 1  ;;  %s4818_s23 = smov (!%p413_p2), 104  }
   0x6   : > { %416 = sbr.rel (%p413_p2) target bundleno = 3014 (0xbc6), region = 76  ;;  %s4819_s24 = smov (!%p413_p2), 112  }
   0x7   : > { %s4820_s25 = smov (!%p413_p2), 120   ;;  %s4821_s26 = smov (!%p413_p2), 96  }
   0xb   : > { %v4683_v0 = vld [vmem:[%s6119_s1 + $0x4] ss:$8 sps:$4 sm:$0xff]   ;;  %vm917_vm0 = vcmask 326656   ;;  %s6134_s30 = smov (!%p458_p3, %s3945_s30), 1  ;;  %v4815_v1 = vmov 0   ;;  %v532_v11 = vld [vmem:[%s6128_s10 + $0x70] sm:$0xff] }
   0xc   : > { %4647 = vset.pattern.permute.xlu0 %v4815_v1  ;;  %4648 = vset.pattern.permute.xlu1 %v4815_v1  ;;  %s4631_s17 = smul.u32 168, %s6134_s30  ;;  %v530_v13 = vld [vmem:[%s6128_s10 + $0x60] sm:$0xff]  ;;  %v533_v15 = vld [vmem:[%s6128_s10 + $0x78] sm:$0xff]  ;;  %v531_v16 = vld [vmem:[%s6128_s10 + $0x68] sm:$0xff]  ;;  %vm960_vm1 = vcmask 1043456   ;;  %vm1356_vm2 = vcmask 785408  }
   0xd   : > { %4004 = vmatprep.mubr.msk.bf16.mxu0 %vm917_vm0, %v4683_v0  ;;  %618 = vperm.xlu0 %4647, %v532_v11   ;;  %v528_v19 = vld [vmem:[%s6128_s10 + $0x50] sm:$0xff]  ;;  %v529_v20 = vld [vmem:[%s6128_s10 + $0x58] sm:$0xff]  ;;  %v526_v24 = vld [vmem:[%s6128_s10 + $0x40] sm:$0xff]  ;;  %vm2892_vm3 = vcmask 392192   ;;  %vm3331_vm4 = vcmask 195584   ;;  %vm4817_vm5 = vmmov 0  }
   0xe   : > { %s4915_s20 = scalar_lea.vmem %s6118_s0, %s4631_s17  ;;  %608 = vperm.xlu1 %4648, %v530_v13   ;;  %v527_v25 = vld [vmem:[%s6128_s10 + $0x48] sm:$0xff]  ;;  %v524_v29 = vld [vmem:[%s6128_s10 + $0x30] sm:$0xff]  ;;  %v525_v30 = vld [vmem:[%s6128_s10 + $0x38] sm:$0xff]  ;;  %vm3695_vm6 = vcmask 261120   ;;  %vm3784_vm7 = vcmask 64512   ;;  %s4193_s27 = sshll.u32 %s6134_s30, 5 }
   0xf   : > { %v4649_v2 = vld [vmem:[%s4915_s20 + $0x74] ss:$8 sps:$4 sm:$0xff]   ;;  %v4651_v3 = vld [vmem:[%s4915_s20 + $0x70] ss:$8 sps:$4 sm:$0xff]   ;;  %v4652_v4 = vld [vmem:[%s4915_s20 + $0x64] ss:$8 sps:$4 sm:$0xff]   ;;  %s467_s16 = scalar_lea.vmem %s6132_s14, %s4193_s27 }
  0x10   : > { %967 = vmatprep.subr.bf16.mxu0 %v4649_v2  ;;  %v4654_v5 = vld [vmem:[%s4915_s20 + $0x60] ss:$8 sps:$4 sm:$0xff]   ;;  %v4655_v6 = vld [vmem:[%s4915_s20 + $0x54] ss:$8 sps:$4 sm:$0xff]   ;;  %v4657_v7 = vld [vmem:[%s4915_s20 + $0x50] ss:$8 sps:$4 sm:$0xff]  }
  0x11   : > { %968 = vmatpush1.bf16.msra.mxu0 %v4651_v3  ;;  %v4658_v8 = vld [vmem:[%s4915_s20 + $0x44] ss:$8 sps:$4 sm:$0xff]   ;;  %v4660_v9 = vld [vmem:[%s4915_s20 + $0x40] ss:$8 sps:$4 sm:$0xff]   ;;  %v4661_v10 = vld [vmem:[%s4915_s20 + $0x34] ss:$8 sps:$4 sm:$0xff]   ;;  %623 = vperm.xlu0 %4647, %v533_v15  }
  0x12   : > { %969 = vmatprep.subr.bf16.mxu0 %v4652_v4  ;;  %v4663_v12 = vld [vmem:[%s4915_s20 + $0x30] ss:$8 sps:$4 sm:$0xff]   ;;  %v4664_v14 = vld [vmem:[%s4915_s20 + $0x24] ss:$8 sps:$4 sm:$0xff]   ;;  %v4666_v17 = vld [vmem:[%s4915_s20 + $0x20] ss:$8 sps:$4 sm:$0xff]   ;;  %613 = vperm.xlu1 %4648, %v531_v16  }
  0x13   : > { %v4667_v18 = vld [vmem:[%s4915_s20 + $0x14] ss:$8 sps:$4 sm:$0xff]   ;;  %v4669_v21 = vld [vmem:[%s4915_s20 + $0x10] ss:$8 sps:$4 sm:$0xff]   ;;  %v4670_v22 = vld [vmem:[%s4915_s20 + $0x4] ss:$8 sps:$4 sm:$0xff]  }
  0x14   : > { %v489_v23 = vld [vmem:[%s4915_s20 + $0xa0] sm:$0xff]  ;;  %v4675_v32 = vld [vmem:[%s4915_s20 + $0x94] ss:$8 sps:$4 sm:$0xff]   ;;  %v523_v34 = vld [vmem:[%s6128_s10 + $0x28] sm:$0xff] }
  0x15   : > { %970 = vmatpush1.bf16.msra.mxu0 %v4654_v5  ;;  %598 = vperm.xlu0 %4647, %v528_v19   ;;  %v4672_v26 = vld [vmem:[%s4915_s20] ss:$8 sps:$4 sm:$0xff]   ;;  %v4002_v27 = vcombine.high %v489_v23, %v489_v23  ;;  %v4001_v28 = vcombine.low %v489_v23, %v489_v23  ;;  %v4677_v35 = vld [vmem:[%s4915_s20 + $0x90] ss:$8 sps:$4 sm:$0xff]   ;;  %v4678_v36 = vld [vmem:[%s4915_s20 + $0x84] ss:$8 sps:$4 sm:$0xff]  }
  0x16   : > { %971 = vmatprep.subr.bf16.mxu0 %v4655_v6  ;;  %603 = vperm.xlu1 %4648, %v529_v20   ;;  %v522_v33 = vld [vmem:[%s6128_s10 + $0x20] sm:$0xff]  ;;  %v520_v37 = vld [vmem:[%s6128_s10 + $0x10] sm:$0xff]  ;;  %v521_v38 = vld [vmem:[%s6128_s10 + $0x18] sm:$0xff] }
  0x17   : > { %v962_v31 = vsel %vm960_vm1, %v4001_v28, 0  ;;  %v4680_v39 = vld [vmem:[%s4915_s20 + $0x80] ss:$8 sps:$4 sm:$0xff]   ;;  %v4684_v43 = vld [vmem:[%s6119_s1 + $0x14] ss:$8 sps:$4 sm:$0xff]  }
  0x18   : > { %v518_v40 = vld [vmem:[%s6128_s10] sm:$0xff]  ;;  %v519_v41 = vld [vmem:[%s6128_s10 + $0x8] sm:$0xff]  ;;  %v544_v44 = vld [vmem:[%s6128_s10 + $0xd0] sm:$0xff] }
  0x19   : > { %972 = vmatpush1.bf16.msra.mxu0 %v4657_v7  ;;  %588 = vperm.xlu0 %4647, %v526_v24   ;;  %v4681_v42 = vld [vmem:[%s6119_s1] ss:$8 sps:$4 sm:$0xff]   ;;  %v545_v45 = vld [vmem:[%s6128_s10 + $0xd8] sm:$0xff]  ;;  %v4687_v49 = vld [vmem:[%s6119_s1 + $0x24] ss:$8 sps:$4 sm:$0xff]  }
  0x1a   : > { %973 = vmatprep.subr.bf16.mxu0 %v4658_v8  ;;  %593 = vperm.xlu1 %4648, %v527_v25   ;;  %v542_v46 = vld [vmem:[%s6128_s10 + $0xc0] sm:$0xff]  ;;  %v543_v47 = vld [vmem:[%s6128_s10 + $0xc8] sm:$0xff]  ;;  %v4686_v48 = vld [vmem:[%s6119_s1 + $0x10] ss:$8 sps:$4 sm:$0xff]  }
  0x1b   : > { %v540_v50 = vld [vmem:[%s6128_s10 + $0xb0] sm:$0xff]  ;;  %v541_v51 = vld [vmem:[%s6128_s10 + $0xb8] sm:$0xff]  ;;  %v538_v52 = vld [vmem:[%s6128_s10 + $0xa0] sm:$0xff] }
  0x1c   : > { %v539_v53 = vld [vmem:[%s6128_s10 + $0xa8] sm:$0xff]  ;;  %v4690_v55 = vld [vmem:[%s6119_s1 + $0x34] ss:$8 sps:$4 sm:$0xff]   ;;  %v534_v58 = vld [vmem:[%s6128_s10 + $0x80] sm:$0xff] }
  0x1d   : > { %974 = vmatpush1.bf16.msra.mxu0 %v4660_v9  ;;  %578 = vperm.xlu0 %4647, %v524_v29   ;;  %v4689_v54 = vld [vmem:[%s6119_s1 + $0x20] ss:$8 sps:$4 sm:$0xff]   ;;  %v536_v56 = vld [vmem:[%s6128_s10 + $0x90] sm:$0xff]  ;;  %v537_v57 = vld [vmem:[%s6128_s10 + $0x98] sm:$0xff] }
  0x1e   : > { %975 = vmatprep.subr.bf16.mxu0 %v4661_v10  ;;  %583 = vperm.xlu1 %4648, %v525_v30   ;;  %v535_v59 = vld [vmem:[%s6128_s10 + $0x88] sm:$0xff]  ;;  %v4692_v60 = vld [vmem:[%s6119_s1 + $0x30] ss:$8 sps:$4 sm:$0xff]   ;;  %v2619_v1 = vld [vmem:[%s6129_s11 + $0x40] sm:$0xff] }
  0x1f   : > { %v4693_v61 = vld [vmem:[%s6119_s1 + $0x44] ss:$8 sps:$4 sm:$0xff]   ;;  %v2622_v62 = vld [vmem:[%s6129_s11 + $0x58] sm:$0xff]  ;;  %v2621_v63 = vld [vmem:[%s6129_s11 + $0x50] sm:$0xff] }
  0x20   : > { %v2620_v0 = vld [vmem:[%s6129_s11 + $0x48] sm:$0xff]  ;;  %v4696_v3 = vld [vmem:[%s6119_s1 + $0x54] ss:$8 sps:$4 sm:$0xff]   ;;  %v2615_v7 = vld [vmem:[%s6129_s11 + $0x20] sm:$0xff] }
  0x21   : > { %976 = vmatpush1.bf16.msra.mxu0 %v4663_v12  ;;  %568 = vperm.xlu0 %4647, %v522_v33   ;;  %v4695_v2 = vld [vmem:[%s6119_s1 + $0x40] ss:$8 sps:$4 sm:$0xff]   ;;  %v2618_v4 = vld [vmem:[%s6129_s11 + $0x38] sm:$0xff]  ;;  %v2617_v5 = vld [vmem:[%s6129_s11 + $0x30] sm:$0xff] }
  0x22   : > { %977 = vmatprep.subr.bf16.mxu0 %v4664_v14  ;;  %573 = vperm.xlu1 %4648, %v523_v34   ;;  %v2616_v6 = vld [vmem:[%s6129_s11 + $0x28] sm:$0xff]  ;;  %v4698_v8 = vld [vmem:[%s6119_s1 + $0x50] ss:$8 sps:$4 sm:$0xff]   ;;  %v2611_v13 = vld [vmem:[%s6129_s11] sm:$0xff] }
  0x23   : > { %v4699_v9 = vld [vmem:[%s6119_s1 + $0x64] ss:$8 sps:$4 sm:$0xff]   ;;  %v2614_v10 = vld [vmem:[%s6129_s11 + $0x18] sm:$0xff]  ;;  %v2613_v11 = vld [vmem:[%s6129_s11 + $0x10] sm:$0xff] }
  0x24   : > { %v2612_v12 = vld [vmem:[%s6129_s11 + $0x8] sm:$0xff]  ;;  %v4702_v15 = vld [vmem:[%s6119_s1 + $0x74] ss:$8 sps:$4 sm:$0xff]   ;;  %v3627_v16 = vld [vmem:[%s6130_s12] sm:$0xff] }
  0x25   : > { %978 = vmatpush1.bf16.msra.mxu0 %v4666_v17  ;;  %558 = vperm.xlu0 %4647, %v520_v37   ;;  %v4701_v14 = vld [vmem:[%s6119_s1 + $0x60] ss:$8 sps:$4 sm:$0xff]   ;;  %v3630_v19 = vld [vmem:[%s6130_s12 + $0x18] sm:$0xff]  ;;  %v4711_v25 = vld [vmem:[%s6119_s1 + $0xa4] ss:$8 sps:$4 sm:$0xff]  }
  0x26   : > { %979 = vmatprep.subr.bf16.mxu0 %v4667_v18  ;;  %563 = vperm.xlu1 %4648, %v521_v38   ;;  %v3628_v17 = vld [vmem:[%s6130_s12 + $0x8] sm:$0xff]  ;;  %v3629_v18 = vld [vmem:[%s6130_s12 + $0x10] sm:$0xff] }
  0x27   : > { %v4704_v20 = vld [vmem:[%s6119_s1 + $0x70] ss:$8 sps:$4 sm:$0xff]   ;;  %v4708_v23 = vld [vmem:[%s6119_s1 + $0x94] ss:$8 sps:$4 sm:$0xff]   ;;  %v4717_v29 = vld [vmem:[%s6119_s1 + $0xc4] ss:$8 sps:$4 sm:$0xff]  }
  0x28   : > { %v4710_v24 = vld [vmem:[%s6119_s1 + $0x90] ss:$8 sps:$4 sm:$0xff]   ;;  %v4719_v30 = vld [vmem:[%s6119_s1 + $0xc0] ss:$8 sps:$4 sm:$0xff]  }
  0x29   : > { %980 = vmatpush1.bf16.msra.mxu0 %v4669_v21  ;;  %548 = vperm.xlu0 %4647, %v518_v40   ;;  %v4705_v21 = vld [vmem:[%s6119_s1 + $0x84] ss:$8 sps:$4 sm:$0xff]   ;;  %v4716_v28 = vld [vmem:[%s6119_s1 + $0xb0] ss:$8 sps:$4 sm:$0xff]  }
  0x2a   : > { %981 = vmatprep.subr.bf16.mxu0 %v4670_v22  ;;  %553 = vperm.xlu1 %4648, %v519_v41   ;;  %v4707_v22 = vld [vmem:[%s6119_s1 + $0x80] ss:$8 sps:$4 sm:$0xff]  }
  0x2d   : > { %982 = vmatpush1.bf16.msra.mxu0 %v4672_v26  ;;  %678 = vperm.xlu0 %4647, %v544_v44   ;;  %v4713_v26 = vld [vmem:[%s6119_s1 + $0xa0] ss:$8 sps:$4 sm:$0xff]  }
  0x2e   : > { %4003 = vmatprep.subr.msk.bf16.mxu0 %vm960_vm1, %v4002_v27  ;;  %683 = vperm.xlu1 %4648, %v545_v45   ;;  %v4714_v27 = vld [vmem:[%s6119_s1 + $0xb4] ss:$8 sps:$4 sm:$0xff]  }
  0x31   : > { %994 = vmatpush2.bf16.msra.mxu0 %v962_v31  ;;  %668 = vperm.xlu0 %4647, %v542_v46   ;;  %v4720_v31 = vld [vmem:[%s6119_s1 + $0xd4] ss:$8 sps:$4 sm:$0xff]  }
  0x32   : > { %995 = vmatprep.subr.bf16.mxu0 %v4675_v32  ;;  %673 = vperm.xlu1 %4648, %v543_v47   ;;  %v4722_v32 = vld [vmem:[%s6119_s1 + $0xd0] ss:$8 sps:$4 sm:$0xff]  }
  0x35   : > { %996 = vmatpush2.bf16.msra.mxu0 %v4677_v35  ;;  %658 = vperm.xlu0 %4647, %v540_v50  }
  0x36   : > { %997 = vmatprep.subr.bf16.mxu0 %v4678_v36  ;;  %663 = vperm.xlu1 %4648, %v541_v51  }
  0x39   : > { %998 = vmatpush2.bf16.msra.mxu0 %v4680_v39  ;;  %648 = vperm.xlu0 %4647, %v538_v52  }
  0x3a   : > { %653 = vperm.xlu1 %4648, %v539_v53  }
  0x3c   : > { %1000 = vmatmul.mubr.bf16.vlgmr.msra.gmra.mxu0 %v4681_v42 }
  0x3d   : > { %4005 = vmatprep.mubr.msk.bf16.mxu0 %vm917_vm0, %v4684_v43  ;;  %638 = vperm.xlu0 %4647, %v536_v56  }
  0x3e   : > { %643 = vperm.xlu1 %4648, %v537_v57  }
  0x41   : > { %628 = vperm.xlu0 %4647, %v534_v58  }
  0x42   : > { %633 = vperm.xlu1 %4648, %v535_v59  }
  0x44   : > { %1010 = vmatmul.mubr.bf16.gmra.mxu0 %v4686_v48 }
  0x45   : > { %4006 = vmatprep.mubr.msk.bf16.mxu0 %vm917_vm0, %v4687_v49  ;;  %2680 = vperm.xlu0 %4647, %v2622_v62  }
  0x46   : > { %2675 = vperm.xlu1 %4648, %v2621_v63  }
  0x49   : > { %2670 = vperm.xlu0 %4647, %v2620_v0  }
  0x4a   : > { %2665 = vperm.xlu1 %4648, %v2619_v1  }
  0x4c   : > { %1020 = vmatmul.mubr.bf16.gmra.mxu0 %v4689_v54 }
  0x4d   : > { %4007 = vmatprep.mubr.msk.bf16.mxu0 %vm917_vm0, %v4690_v55  ;;  %2660 = vperm.xlu0 %4647, %v2618_v4  }
  0x4e   : > { %2655 = vperm.xlu1 %4648, %v2617_v5  }
  0x51   : > { %2650 = vperm.xlu0 %4647, %v2616_v6  }
  0x52   : > { %2645 = vperm.xlu1 %4648, %v2615_v7  }
  0x54   : > { %1030 = vmatmul.mubr.bf16.gmra.mxu0 %v4692_v60  ;;  %v4725_v60 = vld [vmem:[%s6120_s2 + $0x4] ss:$8 sps:$4 sm:$0xff]  }
  0x55   : > { %4008 = vmatprep.mubr.msk.bf16.mxu0 %vm917_vm0, %v4693_v61  ;;  %2640 = vperm.xlu0 %4647, %v2614_v10  }
  0x56   : > { %2635 = vperm.xlu1 %4648, %v2613_v11   ;;  %4042 = vmatprep.mubr.msk.bf16.mxu1 %vm1356_vm2, %v4725_v60 }
  0x59   : > { %2630 = vperm.xlu0 %4647, %v2612_v12  }
  0x5a   : > { %2625 = vperm.xlu1 %4648, %v2611_v13  }
  0x5c   : > { %1040 = vmatmul.mubr.bf16.gmra.mxu0 %v4695_v2 }
  0x5d   : > { %4009 = vmatprep.mubr.msk.bf16.mxu0 %vm917_vm0, %v4696_v3  ;;  %3633 = vperm.xlu0 %4647, %v3627_v16  }
  0x5e   : > { %3638 = vperm.xlu1 %4648, %v3628_v17  }
  0x61   : > { %3643 = vperm.xlu0 %4647, %v3629_v18  }
  0x62   : > { %3648 = vperm.xlu1 %4648, %v3630_v19  }
  0x64   : > { %1050 = vmatmul.mubr.bf16.gmra.mxu0 %v4698_v8 }
  0x65   : > { %4010 = vmatprep.mubr.msk.bf16.mxu0 %vm917_vm0, %v4699_v9 }
  0x6c   : > { %1060 = vmatmul.mubr.bf16.gmra.mxu0 %v4701_v14 }
  0x6d   : > { %4011 = vmatprep.mubr.msk.bf16.mxu0 %vm917_vm0, %v4702_v15 }
  0x74   : > { %1070 = vmatmul.mubr.bf16.gmra.mxu0 %v4704_v20 }
  0x75   : > { %4012 = vmatprep.mubr.msk.bf16.mxu0 %vm917_vm0, %v4705_v21 }
  0x7c   : > { %1080 = vmatmul.mubr.bf16.gmra.mxu0 %v4707_v22 }
  0x7d   : > { %4013 = vmatprep.mubr.msk.bf16.mxu0 %vm917_vm0, %v4708_v23 }
  0x84   : > { %1090 = vmatmul.mubr.bf16.gmra.mxu0 %v4710_v24 }
  0x85   : > { %4014 = vmatprep.mubr.msk.bf16.mxu0 %vm917_vm0, %v4711_v25 }
  0x88   : > { %v5164_v33 = vpop.permute.xlu0 %618 }
  0x89   : > { %v5166_v34 = vpop.permute.xlu1 %608 }
  0x8c   : > { %1100 = vmatmul.mubr.bf16.gmra.mxu0 %v4713_v26  ;;  %v5168_v35 = vpop.permute.xlu0 %623 }
  0x8d   : > { %4015 = vmatprep.mubr.msk.bf16.mxu0 %vm917_vm0, %v4714_v27  ;;  %v5170_v36 = vpop.permute.xlu1 %613 }
  0x90   : > { %v5172_v37 = vpop.permute.xlu0 %598 }
  0x91   : > { %v5174_v38 = vpop.permute.xlu1 %603 }
  0x94   : > { %1110 = vmatmul.mubr.bf16.gmra.mxu0 %v4716_v28  ;;  %v5176_v39 = vpop.permute.xlu0 %588 }
  0x95   : > { %4016 = vmatprep.mubr.msk.bf16.mxu0 %vm917_vm0, %v4717_v29  ;;  %v5178_v40 = vpop.permute.xlu1 %593 }
  0x98   : > { %v5180_v41 = vpop.permute.xlu0 %578 }
  0x99   : > { %v5182_v42 = vpop.permute.xlu1 %583 }
  0x9c   : > { %1120 = vmatmul.mubr.bf16.gmra.mxu0 %v4719_v30  ;;  %v5184_v43 = vpop.permute.xlu0 %568 }
  0x9d   : > { %4017 = vmatprep.mubr.msk.bf16.mxu0 %vm917_vm0, %v4720_v31  ;;  %v5186_v44 = vpop.permute.xlu1 %573 }
  0xa0   : > { %v5188_v45 = vpop.permute.xlu0 %558 }
  0xa1   : > { %v5190_v46 = vpop.permute.xlu1 %563 }
  0xa4   : > { %1130 = vmatmul.mubr.bf16.gmra.mxu0 %v4722_v32  ;;  %v5192_v47 = vpop.permute.xlu0 %548 }
  0xa5   : > { %v5196_v50 = vpop.permute.xlu1 %553 }
  0xfc   : > { %v1001_v48 = vpop.f32.mrf.mxu0 }
  0xfd   : > { %v1002_v51 = vadd.f32 %v1001_v48, %v5192_v47 }
  0xfe   : > { %v5194_v49 = vpop.f32.mrf.mxu0 }
  0xff   : > { %v1140_v55 = vmax.f32 %v1002_v51, 0.0 }
 0x100   : > { %v1005_v52 = vpop.f32.mrf.mxu0 }
 0x101   : > { %v1006_v53 = vadd.f32 %v1005_v52, %v5196_v50 }
 0x102   : > { %v5200_v54 = vpop.f32.mrf.mxu0 }
 0x103   : > { %v1142_v56 = vmax.f32 %v1006_v53, 0.0 }
 0x104   : > { %v1011_v57 = vpop.f32.mrf.mxu0 }
 0x105   : > { %v5202_v58 = vpack.c.bf16 %v1142_v56, %v1140_v55  ;;  %v1012_v61 = vadd.f32 %v1011_v57, %v5188_v45 }
 0x106   : > { %v5204_v59 = vpop.f32.mrf.mxu0 }
 0x107   : > { %v1144_v1 = vmax.f32 %v1012_v61, 0.0 }
 0x108   : > { %v1015_v62 = vpop.f32.mrf.mxu0 }
 0x109   : > { %v1016_v63 = vadd.f32 %v1015_v62, %v5190_v46 }
 0x10a   : > { %v5212_v0 = vpop.f32.mrf.mxu0 }
 0x10b   : > { %v1146_v2 = vmax.f32 %v1016_v63, 0.0 }
 0x10c   : > { %v5214_v3 = vpop.f32.mrf.mxu0 }
 0x10d   : > { %v5216_v4 = vpack.c.bf16 %v1146_v2, %v1144_v1 }
 0x10e   : > { %v5218_v5 = vpop.f32.mrf.mxu0 }
 0x110   : > { %v5220_v6 = vpop.f32.mrf.mxu0 }
 0x112   : > { %v5222_v7 = vpop.f32.mrf.mxu0 }
 0x114   : > { %v5224_v8 = vpop.f32.mrf.mxu0 }
 0x116   : > { %v5226_v9 = vpop.f32.mrf.mxu0 }
 0x118   : > { %v5228_v10 = vpop.f32.mrf.mxu0 }
 0x11a   : > { %v1037_v11 = vpop.f32.mrf.mxu0 }
 0x11c   : > { %v1041_v12 = vpop.f32.mrf.mxu0 }
 0x11e   : > { %v1043_v13 = vpop.f32.mrf.mxu0 }
 0x120   : > { %v1045_v14 = vpop.f32.mrf.mxu0 }
 0x122   : > { %v1047_v15 = vpop.f32.mrf.mxu0 }
 0x124   : > { %v1051_v16 = vpop.f32.mrf.mxu0 }
 0x126   : > { %v1053_v17 = vpop.f32.mrf.mxu0 }
 0x128   : > { %v1055_v18 = vpop.f32.mrf.mxu0 }
 0x12a   : > { %v1057_v19 = vpop.f32.mrf.mxu0 }
 0x12b   : > { %v1058_v55 = vadd.f32 %v1057_v19, %v5174_v38  ;;  %v1048_v19 = vadd.f32 %v1047_v15, %v5178_v40  ;;  %v1038_v15 = vadd.f32 %v1037_v11, %v5182_v42  ;;  %v1028_v11 = vadd.f32 %v5222_v7, %v5186_v44 }
 0x12c   : > { %v1061_v20 = vpop.f32.mrf.mxu0 }
 0x12d   : > { %v1062_v61 = vadd.f32 %v1061_v20, %v5166_v34 }
 0x12e   : > { %v1063_v21 = vpop.f32.mrf.mxu0 }
 0x12f   : > { %v1064_v32 = vadd.f32 %v1063_v21, %v5166_v34  ;;  %v1052_v34 = vadd.f32 %v1051_v16, %v5172_v37  ;;  %v1164_v20 = vmax.f32 %v1062_v61, 0.0  ;;  %v1018_v61 = vadd.f32 %v5212_v0, %v5190_v46 }
 0x130   : > { %v1065_v22 = vpop.f32.mrf.mxu0  ;;  %v1008_v46 = vadd.f32 %v5200_v54, %v5196_v50 }
 0x131   : > { %v1066_v51 = vadd.f32 %v1065_v22, %v5170_v36  ;;  %v1165_v1 = vmax.f32 %v1064_v32, 0.0  ;;  %v1160_v16 = vmax.f32 %v1052_v34, 0.0  ;;  %v1147_v0 = vmax.f32 %v1018_v61, 0.0 }
 0x132   : > { %v1067_v23 = vpop.f32.mrf.mxu0 }
 0x133   : > { %v1068_v27 = vadd.f32 %v1067_v23, %v5170_v36  ;;  %v1166_v36 = vmax.f32 %v1066_v51, 0.0  ;;  %v1163_v23 = vmax.f32 %v1058_v55, 0.0 }
 0x134   : > { %v1071_v24 = vpop.f32.mrf.mxu0 }
 0x135   : > { %v1072_v30 = vadd.f32 %v1071_v24, %v5164_v33  ;;  %v1167_v56 = vmax.f32 %v1068_v27, 0.0  ;;  %v1208_v27 = vpack.c.bf16 %v1166_v36, %v1164_v20 }
 0x136   : > { %v1073_v25 = vpop.f32.mrf.mxu0 }
 0x137   : > { %v1074_v28 = vadd.f32 %v1073_v25, %v5164_v33  ;;  %v1168_v62 = vmax.f32 %v1072_v30, 0.0  ;;  %v1054_v33 = vadd.f32 %v1053_v17, %v5172_v37  ;;  %v1209_v24 = vpack.c.bf16 %v1167_v56, %v1165_v1 }
 0x138   : > { %v1075_v26 = vpop.f32.mrf.mxu0  ;;  %v1044_v17 = vadd.f32 %v1043_v13, %v5176_v39  ;;  %v1042_v37 = vadd.f32 %v1041_v12, %v5176_v39  ;;  %v1034_v13 = vadd.f32 %v5226_v9, %v5180_v41  ;;  %v1155_v39 = vmax.f32 %v1038_v15, 0.0  ;;  %v5300_v15 = vld [vmem:[%s6121_s3 + $0x74] ss:$8 sps:$4 sm:$0xff]  }
 0x139   : > { %v1076_v29 = vadd.f32 %v1075_v26, %v5168_v35  ;;  %v1169_v57 = vmax.f32 %v1074_v28, 0.0  ;;  %v1161_v26 = vmax.f32 %v1054_v33, 0.0  ;;  %v1024_v9 = vadd.f32 %v5218_v5, %v5184_v43  ;;  %1855 = vmatprep.subr.bf16.mxu0 %v5300_v15 }
 0x13a   : > { %v1077_v31 = vpop.f32.mrf.mxu0  ;;  %v1157_v32 = vmax.f32 %v1044_v17, 0.0  ;;  %v1156_v55 = vmax.f32 %v1042_v37, 0.0  ;;  %v1014_v5 = vadd.f32 %v5204_v59, %v5188_v45  ;;  %v684_v17 = vpop.permute.xlu1 %683  ;;  %v5305_v37 = vld [vmem:[%s6121_s3 + $0x70] ss:$8 sps:$4 sm:$0xff]  }
 0x13b   : > { %v1078_v48 = vadd.f32 %v1077_v31, %v5168_v35  ;;  %v1170_v52 = vmax.f32 %v1076_v29, 0.0  ;;  %v1056_v35 = vadd.f32 %v1055_v18, %v5174_v38  ;;  %v1046_v38 = vadd.f32 %v1045_v14, %v5178_v40  ;;  %1856 = vmatpush1.bf16.msra.mxu0 %v5305_v37 }
 0x13c   : > { %v5237_v53 = vpop.f32.mrf.mxu0  ;;  %v1159_v29 = vmax.f32 %v1048_v19, 0.0  ;;  %v1207_v30 = vpack.c.bf16 %v1163_v23, %v1161_v26  ;;  %v1036_v40 = vadd.f32 %v5228_v10, %v5182_v42  ;;  %v1153_v42 = vmax.f32 %v1034_v13, 0.0 }
 0x13d   : > { %v1171_v60 = vmax.f32 %v1078_v48, 0.0  ;;  %v1210_v22 = vpack.c.bf16 %v1170_v52, %v1168_v62  ;;  %v1162_v18 = vmax.f32 %v1056_v35, 0.0  ;;  %v1158_v14 = vmax.f32 %v1046_v38, 0.0  ;;  %v679_v38 = vpop.permute.xlu0 %678 }
 0x13e   : > { %v5241_v63 = vpop.f32.mrf.mxu0  ;;  %v1205_v12 = vpack.c.bf16 %v1159_v29, %v1157_v32  ;;  %v1032_v52 = vadd.f32 %v5224_v8, %v5180_v41  ;;  %v1026_v10 = vadd.f32 %v5220_v6, %v5186_v44  ;;  %v1151_v41 = vmax.f32 %v1028_v11, 0.0  ;;  %v5318_v32 = vld [vmem:[%s6121_s3 + $0x60] ss:$8 sps:$4 sm:$0xff]  }
 0x13f   : > { %v1211_v2 = vpack.c.bf16 %v1171_v60, %v1169_v57  ;;  %v1206_v48 = vpack.c.bf16 %v1162_v18, %v1160_v16  ;;  %v1154_v57 = vmax.f32 %v1036_v40, 0.0  ;;  %v1204_v60 = vpack.c.bf16 %v1158_v14, %v1156_v55  ;;  %v674_v18 = vpop.permute.xlu1 %673  ;;  %v5323_v40 = vld [vmem:[%s6121_s3 + $0x54] ss:$8 sps:$4 sm:$0xff]  }
 0x140   : > { %v5245_v21 = vpop.f32.mrf.mxu0  ;;  %v1203_v8 = vpack.c.bf16 %v1155_v39, %v1153_v42  ;;  %v1022_v62 = vadd.f32 %v5214_v3, %v5184_v43  ;;  %v1152_v33 = vmax.f32 %v1032_v52, 0.0  ;;  %v1149_v44 = vmax.f32 %v1024_v9, 0.0  ;;  %v5330_v9 = vld [vmem:[%s6121_s3 + $0x50] ss:$8 sps:$4 sm:$0xff]  }
 0x141   : > { %1393 = vmatprep.subr.bf16.mxu1 %v1211_v2  ;;  %v1150_v6 = vmax.f32 %v1026_v10, 0.0  ;;  %v1004_v3 = vadd.f32 %v5194_v49, %v5192_v47  ;;  %v1145_v19 = vmax.f32 %v1014_v5, 0.0  ;;  %v1143_v23 = vmax.f32 %v1008_v46, 0.0  ;;  %v669_v29 = vpop.permute.xlu0 %668  ;;  %v5342_v46 = vld [vmem:[%s6121_s3 + $0x40] ss:$8 sps:$4 sm:$0xff]  }
 0x142   : > { %v5249_v25 = vpop.f32.mrf.mxu0  ;;  %1394 = vmatpush1.bf16.msra.mxu1 %v1210_v22  ;;  %v1202_v2 = vpack.c.bf16 %v1154_v57, %v1152_v33  ;;  %v1201_v36 = vpack.c.bf16 %v1151_v41, %v1149_v44  ;;  %v1148_v22 = vmax.f32 %v1022_v62, 0.0  ;;  %v5335_v57 = vld [vmem:[%s6121_s3 + $0x44] ss:$8 sps:$4 sm:$0xff]  }
 0x143   : > { %1395 = vmatprep.subr.bf16.mxu1 %v1209_v24  ;;  %v1199_v24 = vpack.c.bf16 %v1147_v0, %v1145_v19  ;;  %v1141_v20 = vmax.f32 %v1004_v3, 0.0  ;;  %v664_v16 = vpop.permute.xlu1 %663  ;;  %v5347_v3 = vld [vmem:[%s6121_s3 + $0x34] ss:$8 sps:$4 sm:$0xff]  }
 0x144   : > { %v5253_v28 = vpop.f32.mrf.mxu0  ;;  %v1200_v45 = vpack.c.bf16 %v1150_v6, %v1148_v22 }
 0x145   : > { %v1197_v54 = vpack.c.bf16 %v1143_v23, %v1141_v20  ;;  %v659_v14 = vpop.permute.xlu0 %658 }
 0x146   : > { %v5257_v31 = vpop.f32.mrf.mxu0  ;;  %1396 = vmatpush1.bf16.msra.mxu1 %v1208_v27 }
 0x147   : > { %1397 = vmatprep.subr.bf16.mxu1 %v1207_v30 }
 0x148   : > { %v5263_v51 = vpop.f32.mrf.mxu0 }
 0x149   : > { %v649_v44 = vpop.permute.xlu0 %648 }
 0x14a   : > { %v5269_v56 = vpop.f32.mrf.mxu0  ;;  %1398 = vmatpush1.bf16.msra.mxu1 %v1206_v48 }
 0x14b   : > { %1399 = vmatprep.subr.bf16.mxu1 %v1205_v12 }
 0x14c   : > { %v5275_v7 = vpop.f32.mrf.mxu0 }
 0x14e   : > { %v5281_v1 = vpop.f32.mrf.mxu0  ;;  %1400 = vmatpush1.bf16.msra.mxu1 %v1204_v60  ;;  %v654_v60 = vpop.permute.xlu1 %653 }
 0x14f   : > { %1401 = vmatprep.subr.bf16.mxu1 %v1203_v8 }
 0x150   : > { %v5285_v35 = vpop.f32.mrf.mxu0 }
 0x152   : > { %v5289_v43 = vpop.f32.mrf.mxu0  ;;  %1402 = vmatpush1.bf16.msra.mxu1 %v1202_v2 }
 0x153   : > { %1403 = vmatprep.subr.bf16.mxu1 %v1201_v36 }
 0x154   : > { %v5293_v59 = vpop.f32.mrf.mxu0 }
 0x156   : > { %v1113_v34 = vpop.f32.mrf.mxu0  ;;  %1404 = vmatpush1.bf16.msra.mxu1 %v1200_v45 }
 0x157   : > { %1405 = vmatprep.subr.bf16.mxu1 %v1199_v24  ;;  %v1114_v0 = vadd.f32 %v1113_v34, %v659_v14  ;;  %v1108_v24 = vadd.f32 %v5289_v43, %v654_v60  ;;  %v644_v34 = vpop.permute.xlu1 %643  ;;  %v5362_v43 = vld [vmem:[%s6121_s3 + $0x24] ss:$8 sps:$4 sm:$0xff]  }
 0x158   : > { %v1115_v50 = vpop.f32.mrf.mxu0 }
 0x159   : > { %v1116_v19 = vadd.f32 %v1115_v50, %v664_v16  ;;  %v5356_v50 = vld [vmem:[%s6121_s3 + $0x30] ss:$8 sps:$4 sm:$0xff]  }
 0x15a   : > { %v1117_v26 = vpop.f32.mrf.mxu0  ;;  %1406 = vmatpush1.bf16.msra.mxu1 %v5216_v4  ;;  %v5310_v4 = vld [vmem:[%s6121_s3 + $0x64] ss:$8 sps:$4 sm:$0xff]  }
 0x15b   : > { %1407 = vmatprep.subr.bf16.mxu1 %v1197_v54  ;;  %1857 = vmatprep.subr.bf16.mxu0 %v5310_v4  ;;  %v1118_v8 = vadd.f32 %v1117_v26, %v664_v16 }
 0x15c   : > { %v1121_v47 = vpop.f32.mrf.mxu0  ;;  %1858 = vmatpush1.bf16.msra.mxu0 %v5318_v32 }
 0x15d   : > { %1859 = vmatprep.subr.bf16.mxu0 %v5323_v40  ;;  %v1122_v6 = vadd.f32 %v1121_v47, %v669_v29  ;;  %v1187_v20 = vmax.f32 %v1118_v8, 0.0  ;;  %v1185_v47 = vmax.f32 %v1114_v0, 0.0 }
 0x15e   : > { %v1123_v49 = vpop.f32.mrf.mxu0  ;;  %1408 = vmatpush1.bf16.msra.mxu1 %v5202_v58 }
 0x15f   : > { %v1124_v42 = vadd.f32 %v1123_v49, %v669_v29  ;;  %v1188_v26 = vmax.f32 %v1122_v6, 0.0  ;;  %v639_v49 = vpop.permute.xlu0 %638  ;;  %v1098_v29 = vadd.f32 %v5269_v56, %v644_v34  ;;  %v5378_v56 = vld [vmem:[%s6121_s3 + $0x14] ss:$8 sps:$4 sm:$0xff]  }
 0x160   : > { %v1125_v27 = vpop.f32.mrf.mxu0  ;;  %1860 = vmatpush1.bf16.msra.mxu0 %v5330_v9 }
 0x161   : > { %v1126_v61 = vadd.f32 %v1125_v27, %v674_v18  ;;  %1861 = vmatprep.subr.bf16.mxu0 %v5335_v57  ;;  %v1189_v36 = vmax.f32 %v1124_v42, 0.0  ;;  %v1092_v42 = vadd.f32 %v5253_v28, %v639_v49 }
 0x162   : > { %v1127_v30 = vpop.f32.mrf.mxu0 }
 0x163   : > { %v1128_v11 = vadd.f32 %v1127_v30, %v674_v18  ;;  %v1190_v45 = vmax.f32 %v1126_v61, 0.0  ;;  %v1106_v18 = vadd.f32 %v5285_v35, %v654_v60  ;;  %v1183_v30 = vmax.f32 %v1108_v24, 0.0  ;;  %v5388_v60 = vld [vmem:[%s6121_s3 + $0x10] ss:$8 sps:$4 sm:$0xff]   ;;  %v4726_v24 = vld [vmem:[%s6120_s2 + $0x14] ss:$8 sps:$4 sm:$0xff]  }
 0x164   : > { %v1131_v58 = vpop.f32.mrf.mxu0  ;;  %1862 = vmatpush1.bf16.msra.mxu0 %v5342_v46  ;;  %v1094_v35 = vadd.f32 %v5257_v31, %v639_v49  ;;  %v629_v31 = vpop.permute.xlu0 %628  ;;  %v4741_v49 = vld [vmem:[%s6120_s2 + $0x64] ss:$8 sps:$4 sm:$0xff]  }
 0x165   : > { %v1132_v52 = vadd.f32 %v1131_v58, %v679_v38  ;;  %v1191_v62 = vmax.f32 %v1128_v11, 0.0  ;;  %1863 = vmatprep.subr.bf16.mxu0 %v5347_v3  ;;  %v1220_v27 = vpack.c.bf16 %v1190_v45, %v1188_v26  ;;  %v1219_v58 = vpack.c.bf16 %v1187_v20, %v1185_v47  ;;  %v4786_v20 = vld [vmem:[%s6121_s3 + $0xe0] ss:$8 sps:$4 sm:$0xff]   ;;  %v4797_v26 = vld [vmem:[%s6121_s3 + $0xb4] ss:$8 sps:$4 sm:$0xff]  }
 0x166   : > { %v1133_v13 = vpop.f32.mrf.mxu0  ;;  %v1096_v11 = vadd.f32 %v5263_v51, %v644_v34  ;;  %v1084_v51 = vadd.f32 %v5241_v63, %v629_v31  ;;  %v1177_v61 = vmax.f32 %v1094_v35, 0.0  ;;  %v1176_v63 = vmax.f32 %v1092_v42, 0.0  ;;  %v4789_v34 = vld [vmem:[%s6121_s3 + $0xd0] ss:$8 sps:$4 sm:$0xff]   ;;  %v4806_v35 = vld [vmem:[%s6121_s3 + $0x84] ss:$8 sps:$4 sm:$0xff]  }
 0x167   : > { %v1134_v39 = vadd.f32 %v1133_v13, %v679_v38  ;;  %v1192_v2 = vmax.f32 %v1132_v52, 0.0  ;;  %v1221_v54 = vpack.c.bf16 %v1191_v62, %v1189_v36  ;;  %v1104_v38 = vadd.f32 %v5281_v1, %v649_v44  ;;  %v5372_v13 = vld [vmem:[%s6121_s3 + $0x20] ss:$8 sps:$4 sm:$0xff]   ;;  %v4734_v47 = vld [vmem:[%s6120_s2 + $0x30] ss:$8 sps:$4 sm:$0xff]  }
 0x168   : > { %v1135_v48 = vpop.f32.mrf.mxu0  ;;  %1864 = vmatpush1.bf16.msra.mxu0 %v5356_v50  ;;  %v1102_v1 = vadd.f32 %v5275_v7, %v649_v44  ;;  %v1182_v7 = vmax.f32 %v1106_v18, 0.0  ;;  %v1179_v52 = vmax.f32 %v1098_v29, 0.0  ;;  %v1178_v8 = vmax.f32 %v1096_v11, 0.0  ;;  %v5403_v44 = vld [vmem:[%s6121_s3] ss:$8 sps:$4 sm:$0xff]  }
 0x169   : > { %v1136_v12 = vadd.f32 %v1135_v48, %v684_v17  ;;  %v1193_v33 = vmax.f32 %v1134_v39, 0.0  ;;  %1865 = vmatprep.subr.bf16.mxu0 %v5362_v43  ;;  %v634_v48 = vpop.permute.xlu1 %633  ;;  %v1173_v6 = vmax.f32 %v1084_v51, 0.0  ;;  %v4743_v18 = vld [vmem:[%s6120_s2 + $0x60] ss:$8 sps:$4 sm:$0xff]   ;;  %v4747_v29 = vld [vmem:[%s6120_s2 + $0x84] ss:$8 sps:$4 sm:$0xff]  }
 0x16a   : > { %v1137_v55 = vpop.f32.mrf.mxu0  ;;  %v1214_v0 = vpack.c.bf16 %v1178_v8, %v1176_v63  ;;  %v4756_v11 = vld [vmem:[%s6120_s2 + $0xb4] ss:$8 sps:$4 sm:$0xff]  }
 0x16b   : > { %v1138_v10 = vadd.f32 %v1137_v55, %v684_v17  ;;  %v1194_v41 = vmax.f32 %v1136_v12, 0.0  ;;  %v1112_v17 = vadd.f32 %v5293_v59, %v659_v14  ;;  %v1186_v59 = vmax.f32 %v1116_v19, 0.0  ;;  %v4788_v19 = vld [vmem:[%s6121_s3 + $0xe4] ss:$8 sps:$4 sm:$0xff]  }
 0x16c   : > { %v1181_v14 = vmax.f32 %v1104_v38, 0.0  ;;  %1866 = vmatpush1.bf16.msra.mxu0 %v5372_v13  ;;  %v1088_v12 = vadd.f32 %v5249_v25, %v634_v48  ;;  %v5394_v25 = vld [vmem:[%s6121_s3 + $0x4] ss:$8 sps:$4 sm:$0xff]   ;;  %v4731_v38 = vld [vmem:[%s6120_s2 + $0x20] ss:$8 sps:$4 sm:$0xff]  }
 0x16d   : > { %v1195_v5 = vmax.f32 %v1138_v10, 0.0  ;;  %v1222_v23 = vpack.c.bf16 %v1194_v41, %v1192_v2  ;;  %v1184_v16 = vmax.f32 %v1112_v17, 0.0  ;;  %1867 = vmatprep.subr.bf16.mxu0 %v5378_v56  ;;  %v1180_v10 = vmax.f32 %v1102_v1, 0.0  ;;  %v4728_v17 = vld [vmem:[%s6120_s2 + $0x10] ss:$8 sps:$4 sm:$0xff]  }
 0x16e   : > { %v1217_v55 = vpack.c.bf16 %v1183_v30, %v1181_v14  ;;  %v1086_v41 = vadd.f32 %v5245_v21, %v634_v48  ;;  %v1175_v62 = vmax.f32 %v1088_v12, 0.0  ;;  %v5408_v21 = vld [vmem:[%s6121_s3 + $0xf4] ss:$8 sps:$4 sm:$0xff]   ;;  %v4749_v30 = vld [vmem:[%s6120_s2 + $0x80] ss:$8 sps:$4 sm:$0xff]  }
 0x16f   : > { %v1223_v22 = vpack.c.bf16 %v1195_v5, %v1193_v33  ;;  %v1218_v39 = vpack.c.bf16 %v1186_v59, %v1184_v16  ;;  %v1216_v28 = vpack.c.bf16 %v1182_v7, %v1180_v10  ;;  %v1215_v33 = vpack.c.bf16 %v1179_v52, %v1177_v61  ;;  %v4744_v59 = vld [vmem:[%s6120_s2 + $0x74] ss:$8 sps:$4 sm:$0xff]   ;;  %v4801_v16 = vld [vmem:[%s6121_s3 + $0x90] ss:$8 sps:$4 sm:$0xff]   ;;  %v4753_v14 = vld [vmem:[%s6120_s2 + $0xa4] ss:$8 sps:$4 sm:$0xff]  }
 0x170   : > { %1868 = vmatpush1.bf16.msra.mxu0 %v5388_v60  ;;  %v1082_v5 = vadd.f32 %v5237_v53, %v629_v31  ;;  %v1174_v2 = vmax.f32 %v1086_v41, 0.0  ;;  %v1213_v36 = vpack.c.bf16 %v1175_v62, %v1173_v6  ;;  %v4803_v1 = vld [vmem:[%s6121_s3 + $0x94] ss:$8 sps:$4 sm:$0xff]   ;;  %v4755_v48 = vld [vmem:[%s6120_s2 + $0xa0] ss:$8 sps:$4 sm:$0xff]  }
 0x171   : > { %1413 = vmatprep.subr.bf16.mxu1 %v1223_v22  ;;  %1869 = vmatprep.subr.bf16.mxu0 %v5394_v25  ;;  %v4783_v22 = vld [vmem:[%s6121_s3 + $0xf0] ss:$8 sps:$4 sm:$0xff]  }
 0x172   : > { %1414 = vmatpush2.bf16.msra.mxu1 %v1222_v23  ;;  %v1172_v53 = vmax.f32 %v1082_v5, 0.0  ;;  %v4723_v23 = vld [vmem:[%s6120_s2] ss:$8 sps:$4 sm:$0xff]   ;;  %v4758_v7 = vld [vmem:[%s6120_s2 + $0xb0] ss:$8 sps:$4 sm:$0xff]  }
 0x173   : > { %1415 = vmatprep.subr.bf16.mxu1 %v1221_v54  ;;  %v4791_v54 = vld [vmem:[%s6121_s3 + $0xd4] ss:$8 sps:$4 sm:$0xff]  }
 0x174   : > { %1870 = vmatpush1.bf16.msra.mxu0 %v5403_v44  ;;  %v1212_v45 = vpack.c.bf16 %v1174_v2, %v1172_v53 }
 0x175   : > { %1871 = vmatprep.subr.bf16.mxu0 %v5408_v21 }
 0x176   : > { %1416 = vmatpush2.bf16.msra.mxu1 %v1220_v27  ;;  %v4746_v27 = vld [vmem:[%s6120_s2 + $0x70] ss:$8 sps:$4 sm:$0xff]  }
 0x177   : > { %1417 = vmatprep.subr.bf16.mxu1 %v1219_v58  ;;  %v4750_v58 = vld [vmem:[%s6120_s2 + $0x94] ss:$8 sps:$4 sm:$0xff]  }
 0x178   : > { %1872 = vmatpush2.bf16.msra.mxu0 %v4783_v22 }
 0x179   : > { %1873 = vmatprep.subr.bf16.mxu0 %v4788_v19 }
 0x17a   : > { %1418 = vmatpush2.bf16.msra.mxu1 %v1218_v39 }
 0x17b   : > { %1419 = vmatprep.subr.bf16.mxu1 %v1217_v55 }
 0x17c   : > { %1874 = vmatpush2.bf16.msra.mxu0 %v4786_v20 }
 0x17d   : > { %1875 = vmatprep.subr.bf16.mxu0 %v4791_v54 }
 0x17e   : > { %1420 = vmatpush2.bf16.msra.mxu1 %v1216_v28 }
 0x17f   : > { %1421 = vmatprep.subr.bf16.mxu1 %v1215_v33 }
 0x180   : > { %1876 = vmatpush2.bf16.msra.mxu0 %v4789_v34 }
 0x182   : > { %1422 = vmatpush2.bf16.msra.mxu1 %v1214_v0 }
 0x183   : > { %1423 = vmatprep.subr.bf16.mxu1 %v1213_v36 }
 0x186   : > { %1424 = vmatpush2.bf16.msra.mxu1 %v1212_v45 }
 0x187   : > { %1762 = vmatprep.subr.bf16.mxu1 %v5300_v15  ;;  %v4794_v15 = vld [vmem:[%s6121_s3 + $0xc4] ss:$8 sps:$4 sm:$0xff]  }
 0x188   : > { %1877 = vmatprep.subr.bf16.mxu0 %v4794_v15 }
 0x189   : > { %1426 = vmatmul.mubr.bf16.vlgmr.msra.gmra.mxu1 %v4723_v23 }
 0x18a   : > { %4043 = vmatprep.mubr.msk.bf16.mxu1 %vm1356_vm2, %v4726_v24  ;;  %1763 = vmatpush1.bf16.msra.mxu1 %v5305_v37  ;;  %v4729_v37 = vld [vmem:[%s6120_s2 + $0x24] ss:$8 sps:$4 sm:$0xff]  }
 0x18b   : > { %1764 = vmatprep.subr.bf16.mxu1 %v5310_v4  ;;  %v4792_v4 = vld [vmem:[%s6121_s3 + $0xc0] ss:$8 sps:$4 sm:$0xff]  }
 0x18c   : > { %1878 = vmatpush2.bf16.msra.mxu0 %v4792_v4 }
 0x18d   : > { %1879 = vmatprep.subr.bf16.mxu0 %v4797_v26 }
 0x18e   : > { %1765 = vmatpush1.bf16.msra.mxu1 %v5318_v32  ;;  %v4795_v32 = vld [vmem:[%s6121_s3 + $0xb0] ss:$8 sps:$4 sm:$0xff]  }
 0x18f   : > { %1766 = vmatprep.subr.bf16.mxu1 %v5323_v40  ;;  %v4800_v40 = vld [vmem:[%s6121_s3 + $0xa4] ss:$8 sps:$4 sm:$0xff]  }
 0x190   : > { %1880 = vmatpush2.bf16.msra.mxu0 %v4795_v32 }
 0x191   : > { %1436 = vmatmul.mubr.bf16.gmra.mxu1 %v4728_v17  ;;  %1881 = vmatprep.subr.bf16.mxu0 %v4800_v40 }
 0x192   : > { %4044 = vmatprep.mubr.msk.bf16.mxu1 %vm1356_vm2, %v4729_v37  ;;  %1767 = vmatpush1.bf16.msra.mxu1 %v5330_v9  ;;  %v4732_v9 = vld [vmem:[%s6120_s2 + $0x34] ss:$8 sps:$4 sm:$0xff]  }
 0x193   : > { %1768 = vmatprep.subr.bf16.mxu1 %v5335_v57  ;;  %v4798_v57 = vld [vmem:[%s6121_s3 + $0xa0] ss:$8 sps:$4 sm:$0xff]  }
 0x194   : > { %1882 = vmatpush2.bf16.msra.mxu0 %v4798_v57 }
 0x195   : > { %1883 = vmatprep.subr.bf16.mxu0 %v4803_v1 }
 0x196   : > { %1769 = vmatpush1.bf16.msra.mxu1 %v5342_v46  ;;  %v4735_v46 = vld [vmem:[%s6120_s2 + $0x44] ss:$8 sps:$4 sm:$0xff]  }
 0x197   : > { %1770 = vmatprep.subr.bf16.mxu1 %v5347_v3  ;;  %v4737_v3 = vld [vmem:[%s6120_s2 + $0x40] ss:$8 sps:$4 sm:$0xff]  }
 0x198   : > { %1884 = vmatpush2.bf16.msra.mxu0 %v4801_v16 }
 0x199   : > { %1446 = vmatmul.mubr.bf16.gmra.mxu1 %v4731_v38  ;;  %1885 = vmatprep.subr.bf16.mxu0 %v4806_v35 }
 0x19a   : > { %4045 = vmatprep.mubr.msk.bf16.mxu1 %vm1356_vm2, %v4732_v9  ;;  %1771 = vmatpush1.bf16.msra.mxu1 %v5356_v50  ;;  %v4738_v50 = vld [vmem:[%s6120_s2 + $0x54] ss:$8 sps:$4 sm:$0xff]  }
 0x19b   : > { %1772 = vmatprep.subr.bf16.mxu1 %v5362_v43  ;;  %v4740_v43 = vld [vmem:[%s6120_s2 + $0x50] ss:$8 sps:$4 sm:$0xff]  }
 0x19e   : > { %1773 = vmatpush1.bf16.msra.mxu1 %v5372_v13  ;;  %v4752_v13 = vld [vmem:[%s6120_s2 + $0x90] ss:$8 sps:$4 sm:$0xff]  }
 0x19f   : > { %1774 = vmatprep.subr.bf16.mxu1 %v5378_v56  ;;  %v4804_v56 = vld [vmem:[%s6121_s3 + $0x80] ss:$8 sps:$4 sm:$0xff]  }
 0x1a0   : > { %1886 = vmatpush2.bf16.msra.mxu0 %v4804_v56 }
 0x1a1   : > { %1456 = vmatmul.mubr.bf16.gmra.mxu1 %v4734_v47 }
 0x1a2   : > { %4046 = vmatprep.mubr.msk.bf16.mxu1 %vm1356_vm2, %v4735_v46  ;;  %1775 = vmatpush1.bf16.msra.mxu1 %v5388_v60 }
 0x1a3   : > { %1776 = vmatprep.subr.bf16.mxu1 %v5394_v25 }
 0x1a6   : > { %1777 = vmatpush1.bf16.msra.mxu1 %v5403_v44 }
 0x1a7   : > { %1778 = vmatprep.subr.bf16.mxu1 %v5408_v21 }
 0x1a9   : > { %1466 = vmatmul.mubr.bf16.gmra.mxu1 %v4737_v3 }
 0x1aa   : > { %4047 = vmatprep.mubr.msk.bf16.mxu1 %vm1356_vm2, %v4738_v50  ;;  %1779 = vmatpush2.bf16.msra.mxu1 %v4783_v22 }
 0x1ab   : > { %1780 = vmatprep.subr.bf16.mxu1 %v4788_v19 }
 0x1ae   : > { %1781 = vmatpush2.bf16.msra.mxu1 %v4786_v20 }
 0x1af   : > { %1782 = vmatprep.subr.bf16.mxu1 %v4791_v54 }
 0x1b1   : > { %1476 = vmatmul.mubr.bf16.gmra.mxu1 %v4740_v43 }
 0x1b2   : > { %4048 = vmatprep.mubr.msk.bf16.mxu1 %vm1356_vm2, %v4741_v49  ;;  %1783 = vmatpush2.bf16.msra.mxu1 %v4789_v34 }
 0x1b3   : > { %1784 = vmatprep.subr.bf16.mxu1 %v4794_v15 }
 0x1b6   : > { %1785 = vmatpush2.bf16.msra.mxu1 %v4792_v4 }
 0x1b7   : > { %1786 = vmatprep.subr.bf16.mxu1 %v4797_v26 }
 0x1b9   : > { %1486 = vmatmul.mubr.bf16.gmra.mxu1 %v4743_v18 }
 0x1ba   : > { %4049 = vmatprep.mubr.msk.bf16.mxu1 %vm1356_vm2, %v4744_v59  ;;  %1787 = vmatpush2.bf16.msra.mxu1 %v4795_v32 }
 0x1bb   : > { %1788 = vmatprep.subr.bf16.mxu1 %v4800_v40 }
 0x1be   : > { %1789 = vmatpush2.bf16.msra.mxu1 %v4798_v57 }
 0x1bf   : > { %1790 = vmatprep.subr.bf16.mxu1 %v4803_v1 }
 0x1c1   : > { %1496 = vmatmul.mubr.bf16.gmra.mxu1 %v4746_v27 }
 0x1c2   : > { %4050 = vmatprep.mubr.msk.bf16.mxu1 %vm1356_vm2, %v4747_v29  ;;  %1791 = vmatpush2.bf16.msra.mxu1 %v4801_v16 }
 0x1c3   : > { %1792 = vmatprep.subr.bf16.mxu1 %v4806_v35 }
 0x1c6   : > { %1793 = vmatpush2.bf16.msra.mxu1 %v4804_v56 }
 0x1c9   : > { %1506 = vmatmul.mubr.bf16.gmra.mxu1 %v4749_v30 }
 0x1ca   : > { %4051 = vmatprep.mubr.msk.bf16.mxu1 %vm1356_vm2, %v4750_v58 }
 0x1d1   : > { %1516 = vmatmul.mubr.bf16.gmra.mxu1 %v4752_v13 }
 0x1d2   : > { %4052 = vmatprep.mubr.msk.bf16.mxu1 %vm1356_vm2, %v4753_v14 }
 0x1d9   : > { %1526 = vmatmul.mubr.bf16.gmra.mxu1 %v4755_v48 }
 0x1da   : > { %4053 = vmatprep.mubr.msk.bf16.mxu1 %vm1356_vm2, %v4756_v11 }
 0x1e1   : > { %1536 = vmatmul.mubr.bf16.gmra.mxu1 %v4758_v7 }
 0x249   : > { %v1427_v39 = vpop.f32.mrf.mxu1 }
 0x24b   : > { %v1429_v12 = vpop.f32.mrf.mxu1 }
 0x24d   : > { %v1431_v52 = vpop.f32.mrf.mxu1 }
 0x24e   : > { %v1546_v42 = vpack.c.bf16 %v1431_v52, %v1427_v39 }
 0x24f   : > { %v1433_v55 = vpop.f32.mrf.mxu1 }
 0x250   : > { %v1547_v31 = vpack.c.bf16 %v1433_v55, %v1429_v12 }
 0x251   : > { %v1437_v10 = vpop.f32.mrf.mxu1 }
 0x252   : > { %1794 = vmatprep.mubr.bf16.mxu1 %v1547_v31 }
 0x253   : > { %v1439_v60 = vpop.f32.mrf.mxu1  ;;  %1795 = vmatmul.mubr.bf16.vlgmr.msra.gmra.mxu1 %v1546_v42 }
 0x255   : > { %v1441_v51 = vpop.f32.mrf.mxu1 }
 0x256   : > { %v1548_v41 = vpack.c.bf16 %v1441_v51, %v1437_v10  ;;  %v1984_v51 = vld [vmem:[%s6122_s4] sm:$0xff] }
 0x257   : > { %v1443_v61 = vpop.f32.mrf.mxu1 }
 0x258   : > { %v1549_v25 = vpack.c.bf16 %v1443_v61, %v1439_v60 }
 0x259   : > { %v1447_v8 = vpop.f32.mrf.mxu1 }
 0x25a   : > { %1804 = vmatprep.mubr.bf16.mxu1 %v1549_v25 }
 0x25b   : > { %v1449_v28 = vpop.f32.mrf.mxu1  ;;  %1805 = vmatmul.mubr.bf16.gmra.mxu1 %v1548_v41 }
 0x25d   : > { %v1451_v62 = vpop.f32.mrf.mxu1 }
 0x25e   : > { %v1550_v63 = vpack.c.bf16 %v1451_v62, %v1447_v8 }
 0x25f   : > { %v1453_v33 = vpop.f32.mrf.mxu1 }
 0x260   : > { %v1551_v5 = vpack.c.bf16 %v1453_v33, %v1449_v28 }
 0x261   : > { %v1457_v44 = vpop.f32.mrf.mxu1 }
 0x262   : > { %1814 = vmatprep.mubr.bf16.mxu1 %v1551_v5 }
 0x263   : > { %v1459_v6 = vpop.f32.mrf.mxu1  ;;  %1815 = vmatmul.mubr.bf16.gmra.mxu1 %v1550_v63 }
 0x265   : > { %v1461_v21 = vpop.f32.mrf.mxu1 }
 0x266   : > { %v1552_v36 = vpack.c.bf16 %v1461_v21, %v1457_v44 }
 0x267   : > { %v1463_v2 = vpop.f32.mrf.mxu1 }
 0x268   : > { %v1553_v0 = vpack.c.bf16 %v1463_v2, %v1459_v6 }
 0x269   : > { %v1467_v53 = vpop.f32.mrf.mxu1 }
 0x26a   : > { %1824 = vmatprep.mubr.bf16.mxu1 %v1553_v0 }
 0x26b   : > { %v1469_v22 = vpop.f32.mrf.mxu1  ;;  %1825 = vmatmul.mubr.bf16.gmra.mxu1 %v1552_v36 }
 0x26d   : > { %v1471_v19 = vpop.f32.mrf.mxu1 }
 0x26e   : > { %v1554_v24 = vpack.c.bf16 %v1471_v19, %v1467_v53 }
 0x26f   : > { %v1473_v45 = vpop.f32.mrf.mxu1 }
 0x270   : > { %v1555_v23 = vpack.c.bf16 %v1473_v45, %v1469_v22 }
 0x271   : > { %v1477_v20 = vpop.f32.mrf.mxu1 }
 0x272   : > { %1834 = vmatprep.mubr.bf16.mxu1 %v1555_v23 }
 0x273   : > { %v1479_v54 = vpop.f32.mrf.mxu1  ;;  %1835 = vmatmul.mubr.bf16.gmra.mxu1 %v1554_v24 }
 0x275   : > { %v1481_v34 = vpop.f32.mrf.mxu1 }
 0x276   : > { %v1556_v37 = vpack.c.bf16 %v1481_v34, %v1477_v20 }
 0x277   : > { %v1483_v15 = vpop.f32.mrf.mxu1 }
 0x278   : > { %v1557_v17 = vpack.c.bf16 %v1483_v15, %v1479_v54 }
 0x279   : > { %v1487_v4 = vpop.f32.mrf.mxu1 }
 0x27a   : > { %1844 = vmatprep.mubr.bf16.mxu1 %v1557_v17 }
 0x27b   : > { %v1489_v26 = vpop.f32.mrf.mxu1  ;;  %1845 = vmatmul.mubr.bf16.gmra.mxu1 %v1556_v37 }
 0x27c   : > { %4378 = vmatprep.mubr.msk.f32.mxu1 %vm1356_vm2, %v1984_v51 }
 0x27d   : > { %v1491_v32 = vpop.f32.mrf.mxu1 }
 0x27e   : > { %v1558_v9 = vpack.c.bf16 %v1491_v32, %v1487_v4 }
 0x27f   : > { %v1493_v40 = vpop.f32.mrf.mxu1 }
 0x280   : > { %v1559_v38 = vpack.c.bf16 %v1493_v40, %v1489_v26 }
 0x281   : > { %v1497_v57 = vpop.f32.mrf.mxu1 }
 0x282   : > { %1887 = vmatprep.mubr.bf16.mxu0 %v1559_v38 }
 0x283   : > { %v1499_v47 = vpop.f32.mrf.mxu1  ;;  %1888 = vmatmul.mubr.bf16.vlgmr.msra.gmra.mxu0 %v1558_v9 }
 0x285   : > { %v1501_v46 = vpop.f32.mrf.mxu1 }
 0x286   : > { %v1560_v43 = vpack.c.bf16 %v1501_v46, %v1497_v57 }
 0x287   : > { %v1503_v3 = vpop.f32.mrf.mxu1 }
 0x288   : > { %v1561_v50 = vpack.c.bf16 %v1503_v3, %v1499_v47 }
 0x289   : > { %v1507_v49 = vpop.f32.mrf.mxu1 }
 0x28a   : > { %1897 = vmatprep.mubr.bf16.mxu0 %v1561_v50 }
 0x28b   : > { %v1509_v18 = vpop.f32.mrf.mxu1  ;;  %1898 = vmatmul.mubr.bf16.gmra.mxu0 %v1560_v43 }
 0x28d   : > { %v1511_v59 = vpop.f32.mrf.mxu1 }
 0x28e   : > { %v1562_v30 = vpack.c.bf16 %v1511_v59, %v1507_v49 }
 0x28f   : > { %v1513_v27 = vpop.f32.mrf.mxu1 }
 0x290   : > { %v1563_v29 = vpack.c.bf16 %v1513_v27, %v1509_v18 }
 0x291   : > { %v1517_v58 = vpop.f32.mrf.mxu1 }
 0x292   : > { %1907 = vmatprep.mubr.bf16.mxu0 %v1563_v29 }
 0x293   : > { %v1519_v1 = vpop.f32.mrf.mxu1  ;;  %1908 = vmatmul.mubr.bf16.gmra.mxu0 %v1562_v30 }
 0x295   : > { %v1521_v16 = vpop.f32.mrf.mxu1 }
 0x296   : > { %v1564_v14 = vpack.c.bf16 %v1521_v16, %v1517_v58 }
 0x297   : > { %v1523_v13 = vpop.f32.mrf.mxu1 }
 0x298   : > { %v1565_v35 = vpack.c.bf16 %v1523_v13, %v1519_v1 }
 0x299   : > { %v1527_v56 = vpop.f32.mrf.mxu1 }
 0x29a   : > { %1917 = vmatprep.mubr.bf16.mxu0 %v1565_v35 }
 0x29b   : > { %v1529_v48 = vpop.f32.mrf.mxu1  ;;  %1918 = vmatmul.mubr.bf16.gmra.mxu0 %v1564_v14 }
 0x29d   : > { %v1531_v11 = vpop.f32.mrf.mxu1 }
 0x29e   : > { %v1566_v12 = vpack.c.bf16 %v1531_v11, %v1527_v56 }
 0x29f   : > { %v1533_v7 = vpop.f32.mrf.mxu1 }
 0x2a0   : > { %v1567_v39 = vpack.c.bf16 %v1533_v7, %v1529_v48 }
 0x2a1   : > { %v1537_v52 = vpop.f32.mrf.mxu1 }
 0x2a2   : > { %1927 = vmatprep.mubr.bf16.mxu0 %v1567_v39 }
 0x2a3   : > { %v1539_v55 = vpop.f32.mrf.mxu1  ;;  %1928 = vmatmul.mubr.bf16.gmra.mxu0 %v1566_v12 }
 0x2a5   : > { %v1541_v31 = vpop.f32.mrf.mxu1 }
 0x2a6   : > { %v1568_v60 = vpack.c.bf16 %v1541_v31, %v1537_v52 }
 0x2a7   : > { %v1543_v42 = vpop.f32.mrf.mxu1 }
 0x2a8   : > { %v1569_v10 = vpack.c.bf16 %v1543_v42, %v1539_v55 }
 0x2aa   : > { %1937 = vmatprep.mubr.bf16.mxu0 %v1569_v10 }
 0x2ab   : > { %1938 = vmatmul.mubr.bf16.gmra.mxu0 %v1568_v60 }
 0x313   : > { %v1796_v61 = vpop.f32.mrf.mxu1 }
 0x315   : > { %v1798_v25 = vpop.f32.mrf.mxu1 }
 0x316   : > { %v1948_v41 = vmax.f32 %v1796_v61, %v1798_v25 }
 0x317   : > { %v5558_v8 = vpop.f32.mrf.mxu1 }
 0x319   : > { %v5560_v28 = vpop.f32.mrf.mxu1 }
 0x31b   : > { %v5562_v62 = vpop.f32.mrf.mxu1 }
 0x31d   : > { %v5564_v33 = vpop.f32.mrf.mxu1 }
 0x31f   : > { %v5566_v5 = vpop.f32.mrf.mxu1 }
 0x321   : > { %v5568_v63 = vpop.f32.mrf.mxu1 }
 0x323   : > { %v5570_v44 = vpop.f32.mrf.mxu1 }
 0x325   : > { %v5572_v6 = vpop.f32.mrf.mxu1 }
 0x327   : > { %v5574_v21 = vpop.f32.mrf.mxu1 }
 0x329   : > { %v5576_v2 = vpop.f32.mrf.mxu1 }
 0x32b   : > { %v5578_v0 = vpop.f32.mrf.mxu1 }
 0x32d   : > { %v5580_v19 = vpop.f32.mrf.mxu1 }
 0x32f   : > { %v1830_v20 = vpop.f32.mrf.mxu1 }
 0x331   : > { %v1832_v15 = vpop.f32.mrf.mxu1 }
 0x332   : > { %v1955_v51 = vmax.f32 %v1830_v20, %v1832_v15  ;;  %v1952_v20 = vmax.f32 %v5570_v44, %v5572_v6 }
 0x333   : > { %v1836_v4 = vpop.f32.mrf.mxu1 }
 0x335   : > { %v1838_v40 = vpop.f32.mrf.mxu1 }
 0x336   : > { %v1956_v42 = vmax.f32 %v1836_v4, %v1838_v40 }
 0x337   : > { %v1840_v57 = vpop.f32.mrf.mxu1 }
 0x339   : > { %v1842_v3 = vpop.f32.mrf.mxu1 }
 0x33a   : > { %v1957_v52 = vmax.f32 %v1840_v57, %v1842_v3  ;;  %v2001_v3 = vld [vmem:[%s6122_s4 + $0x88] sm:$0xff] }
 0x33b   : > { %v1846_v49 = vpop.f32.mrf.mxu1 }
 0x33d   : > { %v1848_v27 = vpop.f32.mrf.mxu1 }
 0x33e   : > { %v1958_v7 = vmax.f32 %v1846_v49, %v1848_v27  ;;  %v2004_v49 = vld [vmem:[%s6122_s4 + $0xa0] sm:$0xff]  ;;  %v2007_v27 = vld [vmem:[%s6122_s4 + $0xb8] sm:$0xff] }
 0x33f   : > { %v1850_v58 = vpop.f32.mrf.mxu1 }
 0x341   : > { %v1852_v13 = vpop.f32.mrf.mxu1 }
 0x342   : > { %v1959_v56 = vmax.f32 %v1850_v58, %v1852_v13  ;;  %v2286_v58 = vld [vmem:[%s6123_s5 + $0xa8] sm:$0xff]  ;;  %v2283_v13 = vld [vmem:[%s6123_s5 + $0x90] sm:$0xff] }
 0x343   : > { %v1889_v36 = vpop.f32.mrf.mxu0 }
 0x345   : > { %v1891_v53 = vpop.f32.mrf.mxu0 }
 0x346   : > { %v1960_v22 = vmax.f32 %v1889_v36, %v1891_v53 }
 0x347   : > { %v5582_v45 = vpop.f32.mrf.mxu0 }
 0x348   : > { %v5584_v23 = vmax.f32 %v1948_v41, %v1960_v22  ;;  %v1954_v41 = vmax.f32 %v5578_v0, %v5580_v19  ;;  %v1953_v22 = vmax.f32 %v5574_v21, %v5576_v2  ;;  %v1951_v0 = vmax.f32 %v5566_v5, %v5568_v63  ;;  %v1989_v63 = vld [vmem:[%s6122_s4 + $0x28] sm:$0xff] }
 0x349   : > { %v5586_v24 = vpop.f32.mrf.mxu0  ;;  %v1950_v2 = vmax.f32 %v5562_v62, %v5564_v33  ;;  %v1985_v62 = vld [vmem:[%s6122_s4 + $0x8] sm:$0xff]  ;;  %v1986_v33 = vld [vmem:[%s6122_s4 + $0x10] sm:$0xff] }
 0x34a   : > { %v1961_v44 = vmax.f32 %v5582_v45, %v5586_v24  ;;  %v1990_v45 = vld [vmem:[%s6122_s4 + $0x30] sm:$0xff]  ;;  %v1992_v24 = vld [vmem:[%s6122_s4 + $0x40] sm:$0xff] }
 0x34b   : > { %v5588_v54 = vpop.f32.mrf.mxu0 }
 0x34d   : > { %v5590_v34 = vpop.f32.mrf.mxu0 }
 0x34e   : > { %v1962_v19 = vmax.f32 %v5588_v54, %v5590_v34  ;;  %v1993_v54 = vld [vmem:[%s6122_s4 + $0x48] sm:$0xff]  ;;  %v1994_v34 = vld [vmem:[%s6122_s4 + $0x50] sm:$0xff] }
 0x34f   : > { %v5592_v17 = vpop.f32.mrf.mxu0 }
 0x351   : > { %v5594_v37 = vpop.f32.mrf.mxu0 }
 0x352   : > { %v1963_v15 = vmax.f32 %v5592_v17, %v5594_v37  ;;  %v1949_v17 = vmax.f32 %v5558_v8, %v5560_v28  ;;  %v1974_v37 = vmax.f32 %v1950_v2, %v1962_v19  ;;  %v1987_v8 = vld [vmem:[%s6122_s4 + $0x18] sm:$0xff]  ;;  %v1988_v28 = vld [vmem:[%s6122_s4 + $0x20] sm:$0xff]  ;;  %v2271_v2 = vld [vmem:[%s6123_s5 + $0x30] sm:$0xff] }
 0x353   : > { %v1909_v26 = vpop.f32.mrf.mxu0  ;;  %v2272_v19 = vld [vmem:[%s6123_s5 + $0x38] sm:$0xff] }
 0x354   : > { %v1975_v6 = vmax.f32 %v1951_v0, %v1963_v15  ;;  %v1973_v5 = vmax.f32 %v1949_v17, %v1961_v44 }
 0x355   : > { %v1911_v32 = vpop.f32.mrf.mxu0 }
 0x356   : > { %v1964_v4 = vmax.f32 %v1909_v26, %v1911_v32  ;;  %v1995_v26 = vld [vmem:[%s6122_s4 + $0x58] sm:$0xff]  ;;  %v1996_v32 = vld [vmem:[%s6122_s4 + $0x60] sm:$0xff] }
 0x357   : > { %v1913_v38 = vpop.f32.mrf.mxu0 }
 0x358   : > { %v1976_v21 = vmax.f32 %v1952_v20, %v1964_v4  ;;  %v2275_v4 = vld [vmem:[%s6123_s5 + $0x50] sm:$0xff]  ;;  %v2274_v20 = vld [vmem:[%s6123_s5 + $0x48] sm:$0xff] }
 0x359   : > { %v1915_v9 = vpop.f32.mrf.mxu0 }
 0x35a   : > { %v1965_v36 = vmax.f32 %v1913_v38, %v1915_v9  ;;  %v1997_v38 = vld [vmem:[%s6122_s4 + $0x68] sm:$0xff]  ;;  %v1998_v9 = vld [vmem:[%s6122_s4 + $0x70] sm:$0xff] }
 0x35b   : > { %v1919_v47 = vpop.f32.mrf.mxu0 }
 0x35c   : > { %v1977_v57 = vmax.f32 %v1953_v22, %v1965_v36 }
 0x35d   : > { %v1921_v46 = vpop.f32.mrf.mxu0 }
 0x35e   : > { %v1966_v61 = vmax.f32 %v1919_v47, %v1921_v46  ;;  %v1999_v47 = vld [vmem:[%s6122_s4 + $0x78] sm:$0xff]  ;;  %v2000_v46 = vld [vmem:[%s6122_s4 + $0x80] sm:$0xff] }
 0x35f   : > { %v1923_v50 = vpop.f32.mrf.mxu0 }
 0x360   : > { %v1978_v40 = vmax.f32 %v1954_v41, %v1966_v61 }
 0x361   : > { %v1925_v43 = vpop.f32.mrf.mxu0 }
 0x362   : > { %v1967_v10 = vmax.f32 %v1923_v50, %v1925_v43  ;;  %v2002_v50 = vld [vmem:[%s6122_s4 + $0x90] sm:$0xff]  ;;  %v2003_v43 = vld [vmem:[%s6122_s4 + $0x98] sm:$0xff] }
 0x363   : > { %v1929_v18 = vpop.f32.mrf.mxu0 }
 0x364   : > { %v1979_v53 = vmax.f32 %v1955_v51, %v1967_v10 }
 0x365   : > { %v1931_v59 = vpop.f32.mrf.mxu0 }
 0x366   : > { %v1968_v55 = vmax.f32 %v1929_v18, %v1931_v59  ;;  %v2005_v18 = vld [vmem:[%s6122_s4 + $0xa8] sm:$0xff]  ;;  %v2006_v59 = vld [vmem:[%s6122_s4 + $0xb0] sm:$0xff] }
 0x367   : > { %v1933_v29 = vpop.f32.mrf.mxu0 }
 0x368   : > { %v1980_v25 = vmax.f32 %v1956_v42, %v1968_v55 }
 0x369   : > { %v1935_v30 = vpop.f32.mrf.mxu0 }
 0x36a   : > { %v1969_v39 = vmax.f32 %v1933_v29, %v1935_v30  ;;  %v2288_v29 = vld [vmem:[%s6123_s5 + $0xb8] sm:$0xff]  ;;  %v2287_v30 = vld [vmem:[%s6123_s5 + $0xb0] sm:$0xff] }
 0x36b   : > { %v1939_v1 = vpop.f32.mrf.mxu0  ;;  %4414 = vmatprep.subr.mxu0 %v2288_v29 }
 0x36c   : > { %v1981_v60 = vmax.f32 %v1957_v52, %v1969_v39  ;;  %4415 = vmatpush3.msra.mxu0 %v2288_v29  ;;  %v2276_v39 = vld [vmem:[%s6123_s5 + $0x58] sm:$0xff] }
 0x36d   : > { %v1941_v16 = vpop.f32.mrf.mxu0  ;;  %4416 = vmatprep.subr.mxu0 %v2287_v30 }
 0x36e   : > { %v1970_v48 = vmax.f32 %v1939_v1, %v1941_v16  ;;  %4417 = vmatpush3.msra.mxu0 %v2287_v30  ;;  %v2285_v1 = vld [vmem:[%s6123_s5 + $0xa0] sm:$0xff]  ;;  %v2284_v16 = vld [vmem:[%s6123_s5 + $0x98] sm:$0xff] }
 0x36f   : > { %v1943_v35 = vpop.f32.mrf.mxu0  ;;  %4418 = vmatprep.subr.mxu0 %v2286_v58 }
 0x370   : > { %v1982_v31 = vmax.f32 %v1958_v7, %v1970_v48  ;;  %4419 = vmatpush3.msra.mxu0 %v2286_v58  ;;  %v2279_v48 = vld [vmem:[%s6123_s5 + $0x70] sm:$0xff]  ;;  %v2277_v7 = vld [vmem:[%s6123_s5 + $0x60] sm:$0xff] }
 0x371   : > { %v1945_v14 = vpop.f32.mrf.mxu0  ;;  %4420 = vmatprep.subr.mxu0 %v2285_v1 }
 0x372   : > { %v1971_v11 = vmax.f32 %v1943_v35, %v1945_v14  ;;  %4421 = vmatpush3.msra.mxu0 %v2285_v1  ;;  %v2282_v35 = vld [vmem:[%s6123_s5 + $0x88] sm:$0xff]  ;;  %v2281_v14 = vld [vmem:[%s6123_s5 + $0x80] sm:$0xff] }
 0x373   : > { %4422 = vmatprep.subr.mxu0 %v2284_v16 }
 0x374   : > { %v1983_v12 = vmax.f32 %v1959_v56, %v1971_v11  ;;  %4423 = vmatpush3.msra.mxu0 %v2284_v16  ;;  %v2280_v56 = vld [vmem:[%s6123_s5 + $0x78] sm:$0xff]  ;;  %v2278_v11 = vld [vmem:[%s6123_s5 + $0x68] sm:$0xff] }
 0x375   : > { %4424 = vmatprep.subr.mxu0 %v2283_v13 }
 0x376   : > { %4354 = vmatprep.subr.mxu1 %v1983_v12  ;;  %4425 = vmatpush3.msra.mxu0 %v2283_v13 }
 0x377   : > { %4355 = vmatpush3.msra.mxu1 %v1983_v12  ;;  %4426 = vmatprep.subr.mxu0 %v2282_v35 }
 0x378   : > { %4356 = vmatprep.subr.mxu1 %v1982_v31  ;;  %4427 = vmatpush3.msra.mxu0 %v2282_v35 }
 0x379   : > { %4357 = vmatpush3.msra.mxu1 %v1982_v31  ;;  %4428 = vmatprep.subr.mxu0 %v2281_v14 }
 0x37a   : > { %4358 = vmatprep.subr.mxu1 %v1981_v60  ;;  %4429 = vmatpush3.msra.mxu0 %v2281_v14 }
 0x37b   : > { %4359 = vmatpush3.msra.mxu1 %v1981_v60  ;;  %4430 = vmatprep.subr.mxu0 %v2280_v56 }
 0x37c   : > { %4360 = vmatprep.subr.mxu1 %v1980_v25  ;;  %4431 = vmatpush3.msra.mxu0 %v2280_v56 }
 0x37d   : > { %4361 = vmatpush3.msra.mxu1 %v1980_v25  ;;  %4432 = vmatprep.subr.mxu0 %v2279_v48 }
 0x37e   : > { %4362 = vmatprep.subr.mxu1 %v1979_v53  ;;  %4433 = vmatpush3.msra.mxu0 %v2279_v48 }
 0x37f   : > { %4363 = vmatpush3.msra.mxu1 %v1979_v53  ;;  %4434 = vmatprep.subr.mxu0 %v2278_v11 }
 0x380   : > { %4364 = vmatprep.subr.mxu1 %v1978_v40  ;;  %4435 = vmatpush3.msra.mxu0 %v2278_v11 }
 0x381   : > { %4365 = vmatpush3.msra.mxu1 %v1978_v40  ;;  %4436 = vmatprep.subr.mxu0 %v2277_v7 }
 0x382   : > { %4366 = vmatprep.subr.mxu1 %v1977_v57  ;;  %4437 = vmatpush3.msra.mxu0 %v2277_v7  ;;  %v2681_v7 = vpop.permute.xlu0 %2680 }
 0x383   : > { %4367 = vmatpush3.msra.mxu1 %v1977_v57  ;;  %4456 = vmatprep.subr.mxu0 %v2276_v39  ;;  %v2273_v57 = vld [vmem:[%s6123_s5 + $0x40] sm:$0xff] }
 0x384   : > { %4368 = vmatprep.subr.mxu1 %v1976_v21 }
 0x385   : > { %4369 = vmatpush3.msra.mxu1 %v1976_v21 }
 0x386   : > { %4370 = vmatprep.subr.mxu1 %v1975_v6 }
 0x387   : > { %4371 = vmatpush3.msra.mxu1 %v1975_v6  ;;  %v2270_v6 = vld [vmem:[%s6123_s5 + $0x28] sm:$0xff] }
 0x388   : > { %4372 = vmatprep.subr.mxu1 %v1974_v37 }
 0x389   : > { %4373 = vmatpush3.msra.mxu1 %v1974_v37  ;;  %v2269_v37 = vld [vmem:[%s6123_s5 + $0x20] sm:$0xff] }
 0x38a   : > { %4374 = vmatprep.subr.mxu1 %v1973_v5 }
 0x38b   : > { %4375 = vmatpush3.msra.mxu1 %v1973_v5 }
 0x38c   : > { %4376 = vmatprep.subr.mxu1 %v5584_v23 }
 0x38d   : > { %4377 = vmatpush3.msra.mxu1 %v5584_v23  ;;  %v1991_v23 = vld [vmem:[%s6122_s4 + $0x38] sm:$0xff] }
 0x38e   : > { %4379 = vmatmul.mubr.msk.f32.vlgmr.msra.gmra.mxu1 %vm1356_vm2, %v1985_v62  ;;  %v2268_v62 = vld [vmem:[%s6123_s5 + $0x18] sm:$0xff] }
 0x38f   : > { %4381 = vmatprep.mubr.msk.f32.mxu1 %vm1356_vm2, %v1986_v33 }
 0x392   : > { %4382 = vmatmul.mubr.msk.f32.gmra.mxu1 %vm1356_vm2, %v1987_v8  ;;  %v2267_v8 = vld [vmem:[%s6123_s5 + $0x10] sm:$0xff] }
 0x393   : > { %4384 = vmatprep.mubr.msk.f32.mxu1 %vm1356_vm2, %v1988_v28 }
 0x396   : > { %4385 = vmatmul.mubr.msk.f32.gmra.mxu1 %vm1356_vm2, %v1989_v63  ;;  %v2266_v63 = vld [vmem:[%s6123_s5 + $0x8] sm:$0xff] }
 0x397   : > { %4387 = vmatprep.mubr.msk.f32.mxu1 %vm1356_vm2, %v1990_v45 }
 0x39a   : > { %4388 = vmatmul.mubr.msk.f32.gmra.mxu1 %vm1356_vm2, %v1991_v23  ;;  %v2265_v23 = vld [vmem:[%s6123_s5] sm:$0xff] }
 0x39b   : > { %4390 = vmatprep.mubr.msk.f32.mxu1 %vm1356_vm2, %v1992_v24  ;;  %v2707_v24 = vld [vmem:[%s6124_s6] sm:$0xff] }
 0x39e   : > { %4391 = vmatmul.mubr.msk.f32.gmra.mxu1 %vm1356_vm2, %v1993_v54  ;;  %v5847_v54 = vld [vmem:[%s6125_s7 + $0x58] sm:$0xff] }
 0x39f   : > { %4393 = vmatprep.mubr.msk.f32.mxu1 %vm1356_vm2, %v1994_v34  ;;  %v5852_v34 = vld [vmem:[%s6125_s7 + $0x50] sm:$0xff] }
 0x3a2   : > { %4394 = vmatmul.mubr.msk.f32.gmra.mxu1 %vm1356_vm2, %v1995_v26  ;;  %v5857_v26 = vld [vmem:[%s6125_s7 + $0x48] sm:$0xff] }
 0x3a3   : > { %4396 = vmatprep.mubr.msk.f32.mxu1 %vm1356_vm2, %v1996_v32  ;;  %v5863_v32 = vld [vmem:[%s6125_s7 + $0x40] sm:$0xff] }
 0x3a6   : > { %4397 = vmatmul.mubr.msk.f32.gmra.mxu1 %vm1356_vm2, %v1997_v38  ;;  %v5869_v38 = vld [vmem:[%s6125_s7 + $0x38] sm:$0xff] }
 0x3a7   : > { %4399 = vmatprep.mubr.msk.f32.mxu1 %vm1356_vm2, %v1998_v9  ;;  %v5875_v9 = vld [vmem:[%s6125_s7 + $0x30] sm:$0xff] }
 0x3aa   : > { %4400 = vmatmul.mubr.msk.f32.gmra.mxu1 %vm1356_vm2, %v1999_v47  ;;  %v5881_v47 = vld [vmem:[%s6125_s7 + $0x28] sm:$0xff] }
 0x3ab   : > { %4402 = vmatprep.mubr.msk.f32.mxu1 %vm1356_vm2, %v2000_v46  ;;  %v5887_v46 = vld [vmem:[%s6125_s7 + $0x20] sm:$0xff] }
 0x3ae   : > { %4403 = vmatmul.mubr.msk.f32.gmra.mxu1 %vm1356_vm2, %v2001_v3  ;;  %v5893_v3 = vld [vmem:[%s6125_s7 + $0x18] sm:$0xff] }
 0x3af   : > { %4405 = vmatprep.mubr.msk.f32.mxu1 %vm1356_vm2, %v2002_v50 }
 0x3b2   : > { %4406 = vmatmul.mubr.msk.f32.gmra.mxu1 %vm1356_vm2, %v2003_v43 }
 0x3b3   : > { %4408 = vmatprep.mubr.msk.f32.mxu1 %vm1356_vm2, %v2004_v49 }
 0x3b6   : > { %4409 = vmatmul.mubr.msk.f32.gmra.mxu1 %vm1356_vm2, %v2005_v18 }
 0x3b7   : > { %4411 = vmatprep.mubr.msk.f32.mxu1 %vm1356_vm2, %v2006_v59 }
 0x3ba   : > { %4412 = vmatmul.mubr.msk.f32.gmra.mxu1 %vm1356_vm2, %v2007_v27 }
 0x3bb   : > { %4522 = vmatprep.mubr.msk.f32.mxu1 %vm1356_vm2, %v2707_v24 }
 0x44e   : > { %v5747_v12 = vpop.f32.mrf.mxu1 }
 0x450   : > { %v5749_v52 = vpop.f32.mrf.mxu1 }
 0x452   : > { %v5751_v55 = vpop.f32.mrf.mxu1 }
 0x454   : > { %v5753_v31 = vpop.f32.mrf.mxu1 }
 0x456   : > { %v5755_v42 = vpop.f32.mrf.mxu1 }
 0x458   : > { %v5757_v10 = vpop.f32.mrf.mxu1 }
 0x45a   : > { %v5759_v60 = vpop.f32.mrf.mxu1 }
 0x45c   : > { %v5761_v51 = vpop.f32.mrf.mxu1 }
 0x45e   : > { %v5763_v61 = vpop.f32.mrf.mxu1 }
 0x460   : > { %v5765_v25 = vpop.f32.mrf.mxu1 }
 0x462   : > { %v5767_v41 = vpop.f32.mrf.mxu1 }
 0x464   : > { %v5769_v36 = vpop.f32.mrf.mxu1 }
 0x466   : > { %v4398_v53 = vpop.f32.mrf.mxu1 }
 0x468   : > { %v2206_v22 = vpop.f32.mrf.mxu1 }
 0x469   : > { %4438 = vmatprep.mubr.msk.f32.mxu0 %vm1356_vm2, %v2206_v22 }
 0x46a   : > { %v4401_v40 = vpop.f32.mrf.mxu1  ;;  %4439 = vmatmul.mubr.msk.f32.vlgmr.msra.gmra.mxu0 %vm1356_vm2, %v4398_v53 }
 0x46b   : > { %4457 = vmatpush3.msra.mxu0 %v2276_v39 }
 0x46c   : > { %v2216_v15 = vpop.f32.mrf.mxu1  ;;  %4458 = vmatprep.subr.mxu0 %v2275_v4 }
 0x46d   : > { %4441 = vmatprep.mubr.msk.f32.mxu0 %vm1356_vm2, %v2216_v15  ;;  %4459 = vmatpush3.msra.mxu0 %v2275_v4 }
 0x46e   : > { %v4404_v0 = vpop.f32.mrf.mxu1  ;;  %4442 = vmatmul.mubr.msk.f32.gmra.mxu0 %vm1356_vm2, %v4401_v40  ;;  %4460 = vmatprep.subr.mxu0 %v2274_v20 }
 0x46f   : > { %4461 = vmatpush3.msra.mxu0 %v2274_v20 }
 0x470   : > { %v2226_v21 = vpop.f32.mrf.mxu1  ;;  %4462 = vmatprep.subr.mxu0 %v2273_v57 }
 0x471   : > { %4444 = vmatprep.mubr.msk.f32.mxu0 %vm1356_vm2, %v2226_v21  ;;  %4463 = vmatpush3.msra.mxu0 %v2273_v57 }
 0x472   : > { %v4407_v44 = vpop.f32.mrf.mxu1  ;;  %4445 = vmatmul.mubr.msk.f32.gmra.mxu0 %vm1356_vm2, %v4404_v0  ;;  %4464 = vmatprep.subr.mxu0 %v2272_v19 }
 0x473   : > { %4465 = vmatpush3.msra.mxu0 %v2272_v19 }
 0x474   : > { %v2236_v17 = vpop.f32.mrf.mxu1  ;;  %4466 = vmatprep.subr.mxu0 %v2271_v2 }
 0x475   : > { %4447 = vmatprep.mubr.msk.f32.mxu0 %vm1356_vm2, %v2236_v17  ;;  %4467 = vmatpush3.msra.mxu0 %v2271_v2 }
 0x476   : > { %v4410_v5 = vpop.f32.mrf.mxu1  ;;  %4448 = vmatmul.mubr.msk.f32.gmra.mxu0 %vm1356_vm2, %v4407_v44  ;;  %4468 = vmatprep.subr.mxu0 %v2270_v6 }
 0x477   : > { %4469 = vmatpush3.msra.mxu0 %v2270_v6 }
 0x478   : > { %v2246_v33 = vpop.f32.mrf.mxu1  ;;  %4470 = vmatprep.subr.mxu0 %v2269_v37 }
 0x479   : > { %4450 = vmatprep.mubr.msk.f32.mxu0 %vm1356_vm2, %v2246_v33  ;;  %4471 = vmatpush3.msra.mxu0 %v2269_v37 }
 0x47a   : > { %v4413_v28 = vpop.f32.mrf.mxu1  ;;  %4451 = vmatmul.mubr.msk.f32.gmra.mxu0 %vm1356_vm2, %v4410_v5  ;;  %4472 = vmatprep.subr.mxu0 %v2268_v62 }
 0x47b   : > { %4473 = vmatpush3.msra.mxu0 %v2268_v62 }
 0x47c   : > { %v2256_v45 = vpop.f32.mrf.mxu1  ;;  %4474 = vmatprep.subr.mxu0 %v2267_v8 }
 0x47d   : > { %4453 = vmatprep.mubr.msk.f32.mxu0 %vm1356_vm2, %v2256_v45  ;;  %4475 = vmatpush3.msra.mxu0 %v2267_v8 }
 0x47e   : > { %4454 = vmatmul.mubr.msk.f32.gmra.mxu0 %vm1356_vm2, %v4413_v28  ;;  %4476 = vmatprep.subr.mxu0 %v2266_v63 }
 0x47f   : > { %4477 = vmatpush3.msra.mxu0 %v2266_v63  ;;  %4480 = vmatprep.mubr.msk.f32.mxu0 %vm1356_vm2, %v5749_v52 }
 0x480   : > { %4478 = vmatprep.subr.mxu0 %v2265_v23 }
 0x481   : > { %4479 = vmatpush3.msra.mxu0 %v2265_v23 }
 0x482   : > { %4481 = vmatmul.mubr.msk.f32.vlgmr.msra.gmra.mxu0 %vm1356_vm2, %v5747_v12  ;;  %2931 = vmatprep.subr.mxu0 %v5847_v54  ;;  %v2676_v12 = vpop.permute.xlu1 %2675 }
 0x483   : > { %4483 = vmatprep.mubr.msk.f32.mxu0 %vm1356_vm2, %v5753_v31  ;;  %2932 = vmatpush1.msra.mxu0 %v5852_v34  ;;  %v2671_v31 = vpop.permute.xlu0 %2670 }
 0x484   : > { %2933 = vmatprep.subr.mxu0 %v5857_v26 }
 0x485   : > { %2934 = vmatpush1.msra.mxu0 %v5863_v32 }
 0x486   : > { %4484 = vmatmul.mubr.msk.f32.gmra.mxu0 %vm1356_vm2, %v5751_v55  ;;  %2935 = vmatprep.subr.mxu0 %v5869_v38 }
 0x487   : > { %4486 = vmatprep.mubr.msk.f32.mxu0 %vm1356_vm2, %v5757_v10  ;;  %2936 = vmatpush1.msra.mxu0 %v5875_v9  ;;  %v2666_v10 = vpop.permute.xlu1 %2665 }
 0x488   : > { %2937 = vmatprep.subr.mxu0 %v5881_v47 }
 0x489   : > { %2938 = vmatpush1.msra.mxu0 %v5887_v46 }
 0x48a   : > { %4487 = vmatmul.mubr.msk.f32.gmra.mxu0 %vm1356_vm2, %v5755_v42  ;;  %2939 = vmatprep.subr.mxu0 %v5893_v3 }
 0x48b   : > { %4489 = vmatprep.mubr.msk.f32.mxu0 %vm1356_vm2, %v5761_v51  ;;  %v2656_v40 = vpop.permute.xlu1 %2655 }
 0x48e   : > { %4490 = vmatmul.mubr.msk.f32.gmra.mxu0 %vm1356_vm2, %v5759_v60 }
 0x48f   : > { %4492 = vmatprep.mubr.msk.f32.mxu0 %vm1356_vm2, %v5765_v25  ;;  %v2646_v5 = vpop.permute.xlu1 %2645 }
 0x492   : > { %4493 = vmatmul.mubr.msk.f32.gmra.mxu0 %vm1356_vm2, %v5763_v61 }
 0x493   : > { %4495 = vmatprep.mubr.msk.f32.mxu0 %vm1356_vm2, %v5769_v36 }
 0x496   : > { %4496 = vmatmul.mubr.msk.f32.gmra.mxu0 %vm1356_vm2, %v5767_v41  ;;  %v2661_v41 = vpop.permute.xlu0 %2660 }
 0x49a   : > { %v2651_v44 = vpop.permute.xlu0 %2650 }
 0x49e   : > { %v2641_v23 = vpop.permute.xlu0 %2640 }
 0x52a   : > { %v5898_v50 = vpop.f32.mrf.mxu0 }
 0x52c   : > { %v5900_v43 = vpop.f32.mrf.mxu0 }
 0x52e   : > { %v4443_v49 = vpop.f32.mrf.mxu0 }
 0x530   : > { %v2401_v18 = vpop.f32.mrf.mxu0 }
 0x532   : > { %v4446_v59 = vpop.f32.mrf.mxu0 }
 0x534   : > { %v2411_v27 = vpop.f32.mrf.mxu0 }
 0x536   : > { %v4449_v29 = vpop.f32.mrf.mxu0 }
 0x538   : > { %v2421_v30 = vpop.f32.mrf.mxu0 }
 0x53a   : > { %v4452_v58 = vpop.f32.mrf.mxu0 }
 0x53c   : > { %v2431_v1 = vpop.f32.mrf.mxu0 }
 0x53e   : > { %v4455_v16 = vpop.f32.mrf.mxu0 }
 0x540   : > { %v2441_v13 = vpop.f32.mrf.mxu0 }
 0x542   : > { %v4482_v35 = vpop.f32.mrf.mxu0 }
 0x544   : > { %v2552_v14 = vpop.f32.mrf.mxu0 }
 0x546   : > { %v4485_v56 = vpop.f32.mrf.mxu0 }
 0x547   : > { %v2568_v28 = vadd.f32 %v4485_v56, %v4443_v49  ;;  %v2631_v56 = vpop.permute.xlu0 %2630 }
 0x548   : > { %v2562_v48 = vpop.f32.mrf.mxu0 }
 0x549   : > { %v2563_v24 = vadd.f32 %v2562_v48, %v2401_v18 }
 0x54a   : > { %v4488_v11 = vpop.f32.mrf.mxu0 }
 0x54b   : > { %v2578_v6 = vadd.f32 %v4488_v11, %v4446_v59  ;;  %v2636_v59 = vpop.permute.xlu1 %2635 }
 0x54c   : > { %v2572_v39 = vpop.f32.mrf.mxu0  ;;  %v2685_v49 = vadd.f32 %v2636_v59, %v2563_v24 }
 0x54d   : > { %v2573_v62 = vadd.f32 %v2572_v39, %v2411_v27  ;;  %v2688_v63 = vadd.f32 %v2651_v44, %v2578_v6 }
 0x54e   : > { %v4491_v52 = vpop.f32.mrf.mxu0  ;;  %v2697_v39 = vmax.f32 %v2685_v49, 0.0 }
 0x54f   : > { %v2588_v20 = vadd.f32 %v4491_v52, %v4449_v29  ;;  %v2687_v29 = vadd.f32 %v2646_v5, %v2573_v62  ;;  %v2700_v27 = vmax.f32 %v2688_v63, 0.0  ;;  %v2626_v48 = vpop.permute.xlu1 %2625  ;;  %v2711_v52 = vld [vmem:[%s6124_s6 + $0x20] sm:$0xff] }
 0x550   : > { %v2582_v55 = vpop.f32.mrf.mxu0 }
 0x551   : > { %v2583_v19 = vadd.f32 %v2582_v55, %v2421_v30  ;;  %v2690_v17 = vadd.f32 %v2661_v41, %v2588_v20  ;;  %v2880_v55 = vld [vmem:[%s6125_s7] sm:$0xff] }
 0x552   : > { %v4494_v42 = vpop.f32.mrf.mxu0  ;;  %v3149_v20 = vld [vmem:[%s6126_s8] sm:$0xff] }
 0x553   : > { %v2598_v61 = vadd.f32 %v4494_v42, %v4452_v58  ;;  %v2689_v33 = vadd.f32 %v2656_v40, %v2583_v19  ;;  %v2702_v45 = vmax.f32 %v2690_v17, 0.0  ;;  %v2558_v58 = vadd.f32 %v4482_v35, %v5898_v50 }
 0x554   : > { %v2592_v60 = vpop.f32.mrf.mxu0 }
 0x555   : > { %v2593_v53 = vadd.f32 %v2592_v60, %v2431_v1  ;;  %v2692_v15 = vadd.f32 %v2671_v31, %v2598_v61  ;;  %v2701_v30 = vmax.f32 %v2689_v33, 0.0  ;;  %v2686_v1 = vadd.f32 %v2641_v23, %v2568_v28 }
 0x556   : > { %v4497_v51 = vpop.f32.mrf.mxu0  ;;  %v2684_v11 = vadd.f32 %v2631_v56, %v2558_v58  ;;  %v4816_v31 = vmov 0.0  }
 0x557   : > { %v2608_v25 = vadd.f32 %v4497_v51, %v4455_v16  ;;  %v2691_v21 = vadd.f32 %v2666_v10, %v2593_v53  ;;  %v2704_v37 = vmax.f32 %v2692_v15, 0.0  ;;  %v2553_v16 = vadd.f32 %v2552_v14, %v5900_v43  ;;  %v2708_v43 = vld [vmem:[%s6124_s6 + $0x8] sm:$0xff]  ;;  %v2709_v14 = vld [vmem:[%s6124_s6 + $0x10] sm:$0xff]  ;;  %2975 = vmatprep.mubr.f32.mxu0 %v4816_v31 }
 0x558   : > { %v2602_v36 = vpop.f32.mrf.mxu0  ;;  %v2698_v18 = vmax.f32 %v2686_v1, 0.0  ;;  %v2696_v50 = vmax.f32 %v2684_v11, 0.0 }
 0x559   : > { %v2694_v22 = vadd.f32 %v2681_v7, %v2608_v25  ;;  %v2603_v4 = vadd.f32 %v2602_v36, %v2441_v13  ;;  %v2703_v8 = vmax.f32 %v2691_v21, 0.0  ;;  %v2699_v13 = vmax.f32 %v2687_v29, 0.0 }
 0x55a   : > { %v2683_v7 = vadd.f32 %v2626_v48, %v2553_v16 }
 0x55b   : > { %v2706_v57 = vmax.f32 %v2694_v22, 0.0  ;;  %v2693_v0 = vadd.f32 %v2676_v12, %v2603_v4  ;;  %v2710_v12 = vld [vmem:[%s6124_s6 + $0x18] sm:$0xff] }
 0x55c   : > { %v2695_v35 = vmax.f32 %v2683_v7, 0.0 }
 0x55d   : > { %v2705_v2 = vmax.f32 %v2693_v0, 0.0  ;;  %4498 = vmatprep.subr.mxu1 %v2706_v57 }
 0x55e   : > { %4499 = vmatpush3.msra.mxu1 %v2706_v57 }
 0x55f   : > { %4500 = vmatprep.subr.mxu1 %v2705_v2 }
 0x560   : > { %4501 = vmatpush3.msra.mxu1 %v2705_v2 }
 0x561   : > { %4502 = vmatprep.subr.mxu1 %v2704_v37 }
 0x562   : > { %4503 = vmatpush3.msra.mxu1 %v2704_v37 }
 0x563   : > { %4504 = vmatprep.subr.mxu1 %v2703_v8 }
 0x564   : > { %4505 = vmatpush3.msra.mxu1 %v2703_v8 }
 0x565   : > { %4506 = vmatprep.subr.mxu1 %v2702_v45 }
 0x566   : > { %4507 = vmatpush3.msra.mxu1 %v2702_v45 }
 0x567   : > { %4508 = vmatprep.subr.mxu1 %v2701_v30 }
 0x568   : > { %4509 = vmatpush3.msra.mxu1 %v2701_v30 }
 0x569   : > { %4510 = vmatprep.subr.mxu1 %v2700_v27 }
 0x56a   : > { %4511 = vmatpush3.msra.mxu1 %v2700_v27 }
 0x56b   : > { %4512 = vmatprep.subr.mxu1 %v2699_v13 }
 0x56c   : > { %4513 = vmatpush3.msra.mxu1 %v2699_v13 }
 0x56d   : > { %4514 = vmatprep.subr.mxu1 %v2698_v18 }
 0x56e   : > { %4515 = vmatpush3.msra.mxu1 %v2698_v18 }
 0x56f   : > { %4516 = vmatprep.subr.mxu1 %v2697_v39 }
 0x570   : > { %4517 = vmatpush3.msra.mxu1 %v2697_v39 }
 0x571   : > { %4518 = vmatprep.subr.mxu1 %v2696_v50 }
 0x572   : > { %4519 = vmatpush3.msra.mxu1 %v2696_v50 }
 0x573   : > { %4520 = vmatprep.subr.mxu1 %v2695_v35 }
 0x574   : > { %4521 = vmatpush3.msra.mxu1 %v2695_v35 }
 0x575   : > { %4523 = vmatmul.mubr.msk.f32.vlgmr.msra.gmra.mxu1 %vm1356_vm2, %v2708_v43  ;;  %3050 = vmatprep.subr.mxu1 %v5847_v54  ;;  %v2712_v54 = vld [vmem:[%s6124_s6 + $0x28] sm:$0xff] }
 0x576   : > { %4525 = vmatprep.mubr.msk.f32.mxu1 %vm1356_vm2, %v2709_v14  ;;  %3051 = vmatpush1.msra.mxu1 %v5852_v34  ;;  %v2713_v34 = vld [vmem:[%s6124_s6 + $0x30] sm:$0xff] }
 0x577   : > { %3052 = vmatprep.subr.mxu1 %v5857_v26  ;;  %v2714_v26 = vld [vmem:[%s6124_s6 + $0x38] sm:$0xff] }
 0x578   : > { %3053 = vmatpush1.msra.mxu1 %v5863_v32  ;;  %v2715_v32 = vld [vmem:[%s6124_s6 + $0x40] sm:$0xff] }
 0x579   : > { %4526 = vmatmul.mubr.msk.f32.gmra.mxu1 %vm1356_vm2, %v2710_v12  ;;  %3054 = vmatprep.subr.mxu1 %v5869_v38  ;;  %v2716_v38 = vld [vmem:[%s6124_s6 + $0x48] sm:$0xff] }
 0x57a   : > { %4528 = vmatprep.mubr.msk.f32.mxu1 %vm1356_vm2, %v2711_v52  ;;  %3055 = vmatpush1.msra.mxu1 %v5875_v9  ;;  %v2717_v9 = vld [vmem:[%s6124_s6 + $0x50] sm:$0xff] }
 0x57b   : > { %3056 = vmatprep.subr.mxu1 %v5881_v47  ;;  %v2718_v47 = vld [vmem:[%s6124_s6 + $0x58] sm:$0xff] }
 0x57c   : > { %3057 = vmatpush1.msra.mxu1 %v5887_v46  ;;  %v2882_v46 = vld [vmem:[%s6125_s7 + $0x10] sm:$0xff] }
 0x57d   : > { %4529 = vmatmul.mubr.msk.f32.gmra.mxu1 %vm1356_vm2, %v2712_v54  ;;  %3058 = vmatprep.subr.mxu1 %v5893_v3  ;;  %v2881_v3 = vld [vmem:[%s6125_s7 + $0x8] sm:$0xff] }
 0x57e   : > { %4531 = vmatprep.mubr.msk.f32.mxu1 %vm1356_vm2, %v2713_v34  ;;  %2940 = vmatpush1.msra.mxu0 %v2882_v46 }
 0x57f   : > { %3059 = vmatpush1.msra.mxu1 %v2882_v46  ;;  %2941 = vmatprep.subr.mxu0 %v2881_v3  ;;  %v3155_v46 = vld [vmem:[%s6126_s8 + $0x30] sm:$0xff] }
 0x580   : > { %3060 = vmatprep.subr.mxu1 %v2881_v3  ;;  %2942 = vmatpush1.msra.mxu0 %v2880_v55  ;;  %v3156_v3 = vld [vmem:[%s6126_s8 + $0x38] sm:$0xff] }
 0x581   : > { %4532 = vmatmul.mubr.msk.f32.gmra.mxu1 %vm1356_vm2, %v2714_v26  ;;  %v3150_v26 = vld [vmem:[%s6126_s8 + $0x8] sm:$0xff] }
 0x582   : > { %4534 = vmatprep.mubr.msk.f32.mxu1 %vm1356_vm2, %v2715_v32  ;;  %3061 = vmatpush1.msra.mxu1 %v2880_v55  ;;  %v3151_v32 = vld [vmem:[%s6126_s8 + $0x10] sm:$0xff]  ;;  %v3157_v55 = vld [vmem:[%s6126_s8 + $0x40] sm:$0xff] }
 0x585   : > { %4535 = vmatmul.mubr.msk.f32.gmra.mxu1 %vm1356_vm2, %v2716_v38  ;;  %v3152_v38 = vld [vmem:[%s6126_s8 + $0x18] sm:$0xff] }
 0x586   : > { %4537 = vmatprep.mubr.msk.f32.mxu1 %vm1356_vm2, %v2717_v9  ;;  %v3153_v9 = vld [vmem:[%s6126_s8 + $0x20] sm:$0xff] }
 0x589   : > { %4538 = vmatmul.mubr.msk.f32.gmra.mxu1 %vm1356_vm2, %v2718_v47  ;;  %v3154_v47 = vld [vmem:[%s6126_s8 + $0x28] sm:$0xff] }
 0x58a   : > { %3094 = vmatprep.mubr.f32.mxu1 %v4816_v31 }
 0x635   : > { %v4524_v42 = vpop.f32.mrf.mxu1 }
 0x637   : > { %v2821_v10 = vpop.f32.mrf.mxu1 }
 0x638   : > { %4146 = vmatmul.mubr.msk.f32.vlgmr.msra.gmra.mxu0 %vm2892_vm3, %v2821_v10  ;;  %v3159_v10 = vld [vmem:[%s6126_s8 + $0x50] sm:$0xff] }
 0x639   : > { %v4527_v60 = vpop.f32.mrf.mxu1  ;;  %2981 = vmatprep.mubr.f32.mxu0 %v4816_v31 }
 0x63b   : > { %v2831_v51 = vpop.f32.mrf.mxu1 }
 0x63c   : > { %4147 = vmatmul.mubr.msk.f32.gmra.mxu0 %vm2892_vm3, %v4524_v42  ;;  %v3158_v42 = vld [vmem:[%s6126_s8 + $0x48] sm:$0xff] }
 0x63d   : > { %v4530_v61 = vpop.f32.mrf.mxu1  ;;  %2987 = vmatprep.mubr.f32.mxu0 %v4816_v31 }
 0x63f   : > { %v2841_v25 = vpop.f32.mrf.mxu1 }
 0x640   : > { %4148 = vmatmul.mubr.msk.f32.gmra.mxu0 %vm2892_vm3, %v2831_v51  ;;  %v3327_v51 = vld [vmem:[%s6127_s9 + $0x28] sm:$0xff] }
 0x641   : > { %v4533_v41 = vpop.f32.mrf.mxu1  ;;  %2993 = vmatprep.mubr.f32.mxu0 %v4816_v31 }
 0x643   : > { %v2851_v36 = vpop.f32.mrf.mxu1 }
 0x644   : > { %4149 = vmatmul.mubr.msk.f32.gmra.mxu0 %vm2892_vm3, %v4527_v60  ;;  %4152 = vmatmul.mubr.msk.f32.vlgmr.msra.gmra.mxu1 %vm2892_vm3, %v2851_v36  ;;  %v3160_v60 = vld [vmem:[%s6126_s8 + $0x58] sm:$0xff]  ;;  %v3330_v36 = vld [vmem:[%s6127_s9 + $0x40] sm:$0xff] }
 0x645   : > { %2999 = vmatprep.mubr.f32.mxu0 %v4816_v31  ;;  %3100 = vmatprep.mubr.f32.mxu1 %v4816_v31  ;;  %v4536_v53 = vpop.f32.mrf.mxu1 }
 0x646   : > { %4594 = vmatprep.subr.mxu1 %v3330_v36 }
 0x647   : > { %v2861_v22 = vpop.f32.mrf.mxu1  ;;  %4595 = vmatpush3.msra.mxu1 %v3330_v36 }
 0x648   : > { %4150 = vmatmul.mubr.msk.f32.gmra.mxu0 %vm2892_vm3, %v2841_v25  ;;  %4153 = vmatmul.mubr.msk.f32.gmra.mxu1 %vm2892_vm3, %v4533_v41  ;;  %v3325_v25 = vld [vmem:[%s6127_s9 + $0x18] sm:$0xff]  ;;  %v3324_v41 = vld [vmem:[%s6127_s9 + $0x10] sm:$0xff] }
 0x649   : > { %3005 = vmatprep.mubr.f32.mxu0 %v4816_v31  ;;  %3106 = vmatprep.mubr.f32.mxu1 %v4816_v31  ;;  %v4539_v4 = vpop.f32.mrf.mxu1 }
 0x64b   : > { %v2871_v40 = vpop.f32.mrf.mxu1 }
 0x64c   : > { %4151 = vmatmul.mubr.msk.f32.gmra.mxu0 %vm2892_vm3, %v4530_v61  ;;  %4154 = vmatmul.mubr.msk.f32.gmra.mxu1 %vm2892_vm3, %v2861_v22  ;;  %v3326_v61 = vld [vmem:[%s6127_s9 + $0x20] sm:$0xff]  ;;  %v3328_v22 = vld [vmem:[%s6127_s9 + $0x30] sm:$0xff] }
 0x64d   : > { %3112 = vmatprep.mubr.f32.mxu1 %v4816_v31  ;;  %4552 = vmatprep.mubr.msk.f32.mxu0 %vm2892_vm3, %v3149_v20 }
 0x650   : > { %4155 = vmatmul.mubr.msk.f32.gmra.mxu1 %vm2892_vm3, %v4536_v53  ;;  %v3329_v53 = vld [vmem:[%s6127_s9 + $0x38] sm:$0xff] }
 0x651   : > { %3118 = vmatprep.mubr.f32.mxu1 %v4816_v31  ;;  %4596 = vmatprep.subr.mxu1 %v3329_v53 }
 0x652   : > { %4597 = vmatpush3.msra.mxu1 %v3329_v53 }
 0x653   : > { %4598 = vmatprep.subr.mxu1 %v3328_v22 }
 0x654   : > { %4156 = vmatmul.mubr.msk.f32.gmra.mxu1 %vm2892_vm3, %v2871_v40 }
 0x655   : > { %3124 = vmatprep.mubr.f32.mxu1 %v4816_v31  ;;  %4599 = vmatpush3.msra.mxu1 %v3328_v22 }
 0x658   : > { %4157 = vmatmul.mubr.msk.f32.gmra.mxu1 %vm2892_vm3, %v4539_v4 }
 0x6f8   : > { %v2977_v15 = vpop.f32.mrf.mxu0 }
 0x6fa   : > { %v2979_v57 = vpop.f32.mrf.mxu0 }
 0x6fb   : > { %v3131_v52 = vmax.f32 %v2977_v15, %v2979_v57 }
 0x6fc   : > { %v2983_v0 = vpop.f32.mrf.mxu0 }
 0x6fe   : > { %v2985_v19 = vpop.f32.mrf.mxu0 }
 0x6ff   : > { %v3132_v43 = vmax.f32 %v2983_v0, %v2985_v19  ;;  %v3323_v19 = vld [vmem:[%s6127_s9 + $0x8] sm:$0xff] }
 0x700   : > { %v2989_v21 = vpop.f32.mrf.mxu0 }
 0x702   : > { %v2991_v2 = vpop.f32.mrf.mxu0 }
 0x703   : > { %v3133_v39 = vmax.f32 %v2989_v21, %v2991_v2  ;;  %v3322_v2 = vld [vmem:[%s6127_s9] sm:$0xff] }
 0x704   : > { %v2995_v44 = vpop.f32.mrf.mxu0  ;;  %v3096_v6 = vpop.f32.mrf.mxu1 }
 0x706   : > { %v3098_v17 = vpop.f32.mrf.mxu1  ;;  %v2997_v37 = vpop.f32.mrf.mxu0 }
 0x707   : > { %v3134_v18 = vmax.f32 %v2995_v44, %v2997_v37  ;;  %v3137_v14 = vmax.f32 %v3096_v6, %v3098_v17 }
 0x708   : > { %v3102_v5 = vpop.f32.mrf.mxu1  ;;  %v3001_v33 = vpop.f32.mrf.mxu0 }
 0x709   : > { %v3143_v34 = vmax.f32 %v3131_v52, %v3137_v14 }
 0x70a   : > { %v3104_v62 = vpop.f32.mrf.mxu1  ;;  %v3003_v63 = vpop.f32.mrf.mxu0 }
 0x70b   : > { %v3135_v13 = vmax.f32 %v3001_v33, %v3003_v63  ;;  %v3138_v50 = vmax.f32 %v3102_v5, %v3104_v62  ;;  %v3694_v62 = vld [vmem:[%s6131_s13 + $0x18] sm:$0xff]  ;;  %v3693_v33 = vld [vmem:[%s6131_s13 + $0x10] sm:$0xff] }
 0x70c   : > { %v3108_v8 = vpop.f32.mrf.mxu1  ;;  %v3007_v24 = vpop.f32.mrf.mxu0 }
 0x70d   : > { %v3144_v54 = vmax.f32 %v3132_v43, %v3138_v50 }
 0x70e   : > { %v3110_v28 = vpop.f32.mrf.mxu1  ;;  %v3009_v59 = vpop.f32.mrf.mxu0 }
 0x70f   : > { %v3136_v27 = vmax.f32 %v3007_v24, %v3009_v59  ;;  %v3139_v48 = vmax.f32 %v3108_v8, %v3110_v28  ;;  %v3692_v8 = vld [vmem:[%s6131_s13 + $0x8] sm:$0xff]  ;;  %v3691_v28 = vld [vmem:[%s6131_s13] sm:$0xff] }
 0x710   : > { %v3114_v45 = vpop.f32.mrf.mxu1 }
 0x711   : > { %v3145_v12 = vmax.f32 %v3133_v39, %v3139_v48  ;;  %v3639_v39 = vpop.permute.xlu1 %3638 }
 0x712   : > { %v3116_v23 = vpop.f32.mrf.mxu1 }
 0x713   : > { %v3140_v56 = vmax.f32 %v3114_v45, %v3116_v23 }
 0x714   : > { %v3120_v29 = vpop.f32.mrf.mxu1 }
 0x715   : > { %v3146_v35 = vmax.f32 %v3134_v18, %v3140_v56 }
 0x716   : > { %v3122_v30 = vpop.f32.mrf.mxu1 }
 0x717   : > { %v3141_v16 = vmax.f32 %v3120_v29, %v3122_v30 }
 0x718   : > { %v3126_v58 = vpop.f32.mrf.mxu1 }
 0x719   : > { %v3147_v7 = vmax.f32 %v3135_v13, %v3141_v16  ;;  %v3634_v13 = vpop.permute.xlu0 %3633 }
 0x71a   : > { %v3128_v1 = vpop.f32.mrf.mxu1 }
 0x71b   : > { %v3142_v49 = vmax.f32 %v3126_v58, %v3128_v1 }
 0x71d   : > { %v3148_v11 = vmax.f32 %v3136_v27, %v3142_v49 }
 0x71f   : > { %4540 = vmatprep.subr.mxu0 %v3148_v11 }
 0x720   : > { %4541 = vmatpush3.msra.mxu0 %v3148_v11 }
 0x721   : > { %4542 = vmatprep.subr.mxu0 %v3147_v7 }
 0x722   : > { %4543 = vmatpush3.msra.mxu0 %v3147_v7 }
 0x723   : > { %4544 = vmatprep.subr.mxu0 %v3146_v35 }
 0x724   : > { %4545 = vmatpush3.msra.mxu0 %v3146_v35 }
 0x725   : > { %4546 = vmatprep.subr.mxu0 %v3145_v12 }
 0x726   : > { %4547 = vmatpush3.msra.mxu0 %v3145_v12  ;;  %v3644_v12 = vpop.permute.xlu0 %3643 }
 0x727   : > { %4548 = vmatprep.subr.mxu0 %v3144_v54 }
 0x728   : > { %4549 = vmatpush3.msra.mxu0 %v3144_v54 }
 0x729   : > { %4550 = vmatprep.subr.mxu0 %v3143_v34 }
 0x72a   : > { %4551 = vmatpush3.msra.mxu0 %v3143_v34 }
 0x72b   : > { %4553 = vmatmul.mubr.msk.f32.vlgmr.msra.gmra.mxu0 %vm2892_vm3, %v3150_v26  ;;  %4570 = vmatprep.subr.mxu0 %v3327_v51  ;;  %v3649_v26 = vpop.permute.xlu1 %3648 }
 0x72c   : > { %4555 = vmatprep.mubr.msk.f32.mxu0 %vm2892_vm3, %v3151_v32  ;;  %4571 = vmatpush3.msra.mxu0 %v3327_v51 }
 0x72d   : > { %4572 = vmatprep.subr.mxu0 %v3326_v61 }
 0x72e   : > { %4573 = vmatpush3.msra.mxu0 %v3326_v61 }
 0x72f   : > { %4556 = vmatmul.mubr.msk.f32.gmra.mxu0 %vm2892_vm3, %v3152_v38  ;;  %4574 = vmatprep.subr.mxu0 %v3325_v25 }
 0x730   : > { %4558 = vmatprep.mubr.msk.f32.mxu0 %vm2892_vm3, %v3153_v9  ;;  %4575 = vmatpush3.msra.mxu0 %v3325_v25 }
 0x731   : > { %4582 = vmatprep.subr.mxu0 %v3324_v41 }
 0x733   : > { %4559 = vmatmul.mubr.msk.f32.gmra.mxu0 %vm2892_vm3, %v3154_v47 }
 0x734   : > { %4561 = vmatprep.mubr.msk.f32.mxu0 %vm2892_vm3, %v3155_v46 }
 0x737   : > { %4562 = vmatmul.mubr.msk.f32.gmra.mxu0 %vm2892_vm3, %v3156_v3 }
 0x738   : > { %4564 = vmatprep.mubr.msk.f32.mxu0 %vm2892_vm3, %v3157_v55 }
 0x73b   : > { %4565 = vmatmul.mubr.msk.f32.gmra.mxu0 %vm2892_vm3, %v3158_v42 }
 0x73c   : > { %4567 = vmatprep.mubr.msk.f32.mxu0 %vm2892_vm3, %v3159_v10 }
 0x73f   : > { %4568 = vmatmul.mubr.msk.f32.gmra.mxu0 %vm2892_vm3, %v3160_v60 }
 0x7eb   : > { %v4554_v4 = vpop.f32.mrf.mxu0 }
 0x7ed   : > { %v3263_v40 = vpop.f32.mrf.mxu0 }
 0x7ef   : > { %v4557_v20 = vpop.f32.mrf.mxu0 }
 0x7f1   : > { %v3273_v15 = vpop.f32.mrf.mxu0 }
 0x7f3   : > { %v4560_v57 = vpop.f32.mrf.mxu0 }
 0x7f5   : > { %v3283_v0 = vpop.f32.mrf.mxu0 }
 0x7f6   : > { %4576 = vmatprep.mubr.msk.f32.mxu0 %vm3331_vm4, %v3283_v0 }
 0x7f7   : > { %v4563_v21 = vpop.f32.mrf.mxu0  ;;  %4577 = vmatmul.mubr.msk.f32.vlgmr.msra.gmra.mxu0 %vm3331_vm4, %v4560_v57 }
 0x7f8   : > { %4583 = vmatpush3.msra.mxu0 %v3324_v41 }
 0x7f9   : > { %v3293_v44 = vpop.f32.mrf.mxu0  ;;  %4584 = vmatprep.subr.mxu0 %v3323_v19 }
 0x7fa   : > { %4579 = vmatprep.mubr.msk.f32.mxu0 %vm3331_vm4, %v3293_v44  ;;  %4585 = vmatpush3.msra.mxu0 %v3323_v19 }
 0x7fb   : > { %4580 = vmatmul.mubr.msk.f32.gmra.mxu0 %vm3331_vm4, %v4563_v21  ;;  %v4566_v6 = vpop.f32.mrf.mxu0  ;;  %4586 = vmatprep.subr.mxu0 %v3322_v2 }
 0x7fc   : > { %4587 = vmatpush3.msra.mxu0 %v3322_v2  ;;  %4588 = vmatprep.mubr.msk.f32.mxu0 %vm3331_vm4, %v3263_v40 }
 0x7fd   : > { %v3303_v17 = vpop.f32.mrf.mxu0  ;;  %4606 = vmatprep.subr.mxu0 %v4816_v31 }
 0x7fe   : > { %4600 = vmatprep.mubr.msk.f32.mxu1 %vm3331_vm4, %v3303_v17 }
 0x7ff   : > { %4589 = vmatmul.mubr.msk.f32.vlgmr.msra.gmra.mxu0 %vm3331_vm4, %v4554_v4  ;;  %v4569_v37 = vpop.f32.mrf.mxu0  ;;  %4601 = vmatmul.mubr.msk.f32.vlgmr.msra.gmra.mxu1 %vm3331_vm4, %v4566_v6 }
 0x800   : > { %4591 = vmatprep.mubr.msk.f32.mxu0 %vm3331_vm4, %v3273_v15  ;;  %4607 = vmatpush3.msra.mxu0 %v3694_v62 }
 0x801   : > { %v3313_v5 = vpop.f32.mrf.mxu0  ;;  %4608 = vmatprep.subr.mxu0 %v4816_v31 }
 0x802   : > { %4603 = vmatprep.mubr.msk.f32.mxu1 %vm3331_vm4, %v3313_v5  ;;  %4609 = vmatpush3.msra.mxu0 %v3693_v33 }
 0x803   : > { %4592 = vmatmul.mubr.msk.f32.gmra.mxu0 %vm3331_vm4, %v4557_v20  ;;  %4604 = vmatmul.mubr.msk.f32.gmra.mxu1 %vm3331_vm4, %v4569_v37 }
 0x804   : > { %4614 = vmatprep.mubr.msk.f32.mxu0 %vm4817_vm5, %v4816_v31  ;;  %4610 = vmatprep.subr.mxu0 %v4816_v31 }
 0x805   : > { %4611 = vmatpush3.msra.mxu0 %v3692_v8 }
 0x806   : > { %4612 = vmatprep.subr.mxu0 %v4816_v31 }
 0x807   : > { %4613 = vmatpush3.msra.mxu0 %v3691_v28 }
 0x8b7   : > { %v4578_v63 = vpop.f32.mrf.mxu0 }
 0x8b9   : > { %v3410_v45 = vpop.f32.mrf.mxu0 }
 0x8bb   : > { %v4581_v23 = vpop.f32.mrf.mxu0 }
 0x8bd   : > { %v3420_v24 = vpop.f32.mrf.mxu0 }
 0x8bf   : > { %v4590_v29 = vpop.f32.mrf.mxu0  ;;  %v4602_v30 = vpop.f32.mrf.mxu1 }
 0x8c0   : > { %v3513_v59 = vadd.f32 %v4590_v29, %v4578_v63 }
 0x8c1   : > { %v3507_v58 = vpop.f32.mrf.mxu0  ;;  %v3604_v1 = vpop.f32.mrf.mxu1 }
 0x8c2   : > { %v3508_v27 = vadd.f32 %v3507_v58, %v3410_v45  ;;  %v3624_v56 = vadd.f32 %v4602_v30, %v3513_v59 }
 0x8c3   : > { %v4593_v16 = vpop.f32.mrf.mxu0  ;;  %v4605_v49 = vpop.f32.mrf.mxu1 }
 0x8c4   : > { %v3623_v11 = vadd.f32 %v3604_v1, %v3508_v27  ;;  %v3652_v50 = vadd.f32 %v3639_v39, %v3624_v56  ;;  %v3523_v35 = vadd.f32 %v4593_v16, %v4581_v23 }
 0x8c5   : > { %v3517_v18 = vpop.f32.mrf.mxu0  ;;  %v3614_v48 = vpop.f32.mrf.mxu1 }
 0x8c6   : > { %v3651_v7 = vadd.f32 %v3634_v13, %v3623_v11  ;;  %v3518_v31 = vadd.f32 %v3517_v18, %v3420_v24  ;;  %v3656_v52 = vmax.f32 %v3652_v50, 0.0  ;;  %v3626_v54 = vadd.f32 %v4605_v49, %v3523_v35 }
 0x8c8   : > { %v3655_v43 = vmax.f32 %v3651_v7, 0.0  ;;  %v3625_v14 = vadd.f32 %v3614_v48, %v3518_v31  ;;  %v3654_v32 = vadd.f32 %v3649_v26, %v3626_v54 }
 0x8ca   : > { %3659 = vxpose.xlu0.b32.start [1/4] (short) (narrow) %v3655_v43, 8  ;;  %v3653_v34 = vadd.f32 %v3644_v12, %v3625_v14  ;;  %v3658_v9 = vmax.f32 %v3654_v32, 0.0 }
 0x8cc   : > { %v3657_v38 = vmax.f32 %v3653_v34, 0.0 }
 0x8ce   : > { %3660 = vxpose.xlu0.b32.cont [2/4] (short) (narrow) %v3656_v52, 8 }
 0x8d2   : > { %3661 = vxpose.xlu0.b32.cont [3/4] (short) (narrow) %v3657_v38, 8 }
 0x8d6   : > { %3662 = vxpose.xlu0.b32.end [4/4] (short) (narrow) %v3658_v9, 8 }
 0x946   : > { %v3675_v47 = vpop.trf.xlu0 }
 0x947   : > { %4615 = vmatmul.mubr.msk.f32.vlgmr.msra.gmra.mxu0 %vm3695_vm6, %v3675_v47 }
 0xa07   : > { %v3765_v46 = vpop.f32.mrf.mxu0 }
 0xa08   : > { %3774 = vrot.lane.b32.xlu1 %v3765_v46, %s4818_s23  ;;  %4625 = vmatprep.mubr.msk.f32.mxu1 %vm3784_vm7, %v3765_v46 }
 0xa09   : > { %v4616_v3 = vpop.f32.mrf.mxu0 }
 0xa0c   : > { %3772 = vrot.lane.b32.xlu1 %v3765_v46, %s4819_s24 }
 0xa10   : > { %3770 = vrot.lane.b32.xlu1 %v3765_v46, %s4820_s25 }
 0xa7a   : > { %v3775_v55 = vpop.permute.xlu1 %3774 }
 0xa7b   : > { %3782 = vrot.lane.b32.xlu1 %v3775_v55, %s4821_s26 }
 0xa7e   : > { %v3773_v42 = vpop.permute.xlu1 %3772 }
 0xa7f   : > { %3780 = vrot.lane.b32.xlu1 %v3773_v42, %s4821_s26 }
 0xa82   : > { %v3771_v10 = vpop.permute.xlu1 %3770 }
 0xa83   : > { %3778 = vrot.lane.b32.xlu1 %v3771_v10, %s4821_s26 }
 0xa87   : > { %3776 = vrot.lane.b32.xlu1 %v3765_v46, %s4821_s26 }
 0xaed   : > { %v3783_v60 = vpop.permute.xlu1 %3782 }
 0xaee   : > { %4617 = vmatprep.subr.msk.mxu1 %vm3784_vm7, %v3783_v60 }
 0xaef   : > { %4618 = vmatpush3.xpose.msk.msra.mxu1 %vm3784_vm7, %v3783_v60 }
 0xaf1   : > { %v3781_v51 = vpop.permute.xlu1 %3780 }
 0xaf2   : > { %4619 = vmatprep.subr.msk.mxu1 %vm3784_vm7, %v3781_v51 }
 0xaf3   : > { %4620 = vmatpush3.xpose.msk.msra.mxu1 %vm3784_vm7, %v3781_v51 }
 0xaf5   : > { %v3779_v61 = vpop.permute.xlu1 %3778 }
 0xaf6   : > { %4621 = vmatprep.subr.msk.mxu1 %vm3784_vm7, %v3779_v61 }
 0xaf7   : > { %4622 = vmatpush3.xpose.msk.msra.mxu1 %vm3784_vm7, %v3779_v61 }
 0xaf9   : > { %v3777_v25 = vpop.permute.xlu1 %3776 }
 0xafa   : > { %4623 = vmatprep.subr.msk.mxu1 %vm3784_vm7, %v3777_v25 }
 0xafb   : > { %4624 = vmatpush3.xpose.msk.msra.mxu1 %vm3784_vm7, %v3777_v25 }
 0xafe   : > { %4626 = vmatmul.mubr.msk.f32.vlgmr.msra.gmra.mxu1 %vm3784_vm7, %v3771_v10 }
 0xaff   : > { %4628 = vmatprep.mubr.msk.f32.mxu1 %vm3784_vm7, %v3773_v42 }
 0xb02   : > { %4629 = vmatmul.mubr.msk.f32.gmra.mxu1 %vm3784_vm7, %v3775_v55 }
 0xbbe   : > { %v4627_v41 = vpop.f32.mrf.mxu1 }
 0xbbf   : > { %3887 = vst.msk [vmem:[%s467_s16 + $0x8] sm:$0xff] %vm3695_vm6, %v4627_v41 }
 0xbc0   : > { %v3867_v36 = vpop.f32.mrf.mxu1 }
 0xbc1   : > { %3886 = vst.msk [vmem:[%s467_s16] sm:$0xff] %vm3695_vm6, %v3867_v36 }
 0xbc2   : > { %v4630_v53 = vpop.f32.mrf.mxu1 }
 0xbc3   : > { %3889 = vst.msk [vmem:[%s467_s16 + $0x18] sm:$0xff] %vm3695_vm6, %v4630_v53 }
 0xbc4   : > { %v3877_v22 = vpop.f32.mrf.mxu1 }
 0xbc5   : > { %3888 = vst.msk [vmem:[%s467_s16 + $0x10] sm:$0xff] %vm3695_vm6, %v3877_v22 }
 0xbc6 PF: > { %s24_s29 = sadd.s32 1, %s4813_s29  }
 0xbc7   : > { %p21_p4 = scmp.ge.s32.totalorder %s24_s29, 4  }
 0xbc9   :  { %23 = sbr.rel (!%p21_p4) target bundleno = 1 (0x1), region = 106 }

</bundles_post_ra>
